<compile_context>
chip_gen: v6e
topology: v6e:2x2x1
jax: 0.10.0
libtpu: 0.0.40
codegen_flags: <defaults>
</compile_context>

<pallas_src>
import functools

import jax
import jax.numpy as jnp
from jax import lax
from jax.experimental import pallas as pl
from jax.experimental.pallas import tpu as pltpu


def _conv_bn_act_kernel(*refs, kh, kw, stride, th, halo, act):
    """One (batch, row-tile, cout-tile) grid step.

    refs (halo > 0):  x_main, x_halo, w, shift, out
    refs (halo == 0): x_main,          w, shift, out

    x_main: (1, HBLK, Wp, Cin)   rows of the zero-padded input for this tile
    x_halo: (1, HB, Wp, Cin)     rows right after the main block (first `halo` used)
    w:      (KH*KW*Cin, TC)      im2col weight tile, BN scale pre-folded
    shift:  (1, TC)              folded BN shift (= beta - mean*scale) or conv bias
    out:    (1, TH, Wo, TC)
    """
    if halo > 0:
        x_ref, xh_ref, w_ref, shift_ref, o_ref = refs
    else:
        x_ref, w_ref, shift_ref, o_ref = refs

    wo, tc = o_ref.shape[2], o_ref.shape[3]
    cin = x_ref.shape[3]

    xwin = x_ref[0]                                        # (HBLK, Wp, Cin)
    if halo > 0:
        xwin = jnp.concatenate([xwin, xh_ref[0, :halo]], axis=0)

    # im2col: fold the kh*kw taps into the contraction dim so the MXU sees K = kh*kw*Cin
    # in a single matmul instead of kh*kw matmuls of depth Cin.
    pieces = []
    for i in range(kh):
        for j in range(kw):
            if stride == 1:
                p = lax.slice(xwin, (i, j, 0), (i + th, j + wo, cin))
            else:
                p = lax.slice(
                    xwin, (i, j, 0),
                    (i + (th - 1) * stride + 1, j + (wo - 1) * stride + 1, cin),
                    (stride, stride, 1))
            pieces.append(p)                                # (TH, Wo, Cin)
    patch = pieces[0] if len(pieces) == 1 else jnp.concatenate(pieces, axis=-1)
    patch = patch.reshape(th * wo, kh * kw * cin)

    acc = jnp.dot(patch, w_ref[...], preferred_element_type=jnp.float32)

    y = acc + shift_ref[...]                                # f32 epilogue
    if act == "relu6":
        y = jnp.clip(y, 0.0, 6.0)
    elif act == "relu":
        y = jnp.maximum(y, 0.0)
    o_ref[0] = y.reshape(th, wo, tc).astype(o_ref.dtype)


def mobilenet_v1_conv_nhwc(x, weight_hwio, bn_scale=None, bn_shift=None, bias=None, *,
                           stride=1, tf_padding=True, use_normalization=True,
                           use_activation=True, row_tile=256, cout_tile=None,
                           compute_dtype=jnp.bfloat16):
    """NHWC core.  x: (N, H, W, Cin), weight_hwio: (KH, KW, Cin, Cout) -> (N, Ho, Wo, Cout)."""
    n, h, w, cin = x.shape
    kh, kw, wcin, cout = weight_hwio.shape
    assert wcin == cin, (wcin, cin)
    s = int(stride)
    out_dtype = x.dtype
    itemsize = jnp.dtype(compute_dtype).itemsize

    # --- TF "SAME" padding amounts (matches apply_tf_padding) ---
    if tf_padding:
        pad_h = max(kh - s, 0) if h % s == 0 else max(kh - h % s, 0)
        pad_w = max(kw - s, 0) if w % s == 0 else max(kw - w % s, 0)
        pt, pleft = pad_h // 2, pad_w // 2
        pb, pright = pad_h - pt, pad_w - pleft
    else:
        pt = pb = (kh - 1) // 2
        pleft = pright = (kw - 1) // 2
    hp, wp = h + pt + pb, w + pleft + pright
    ho = (hp - kh) // s + 1
    wo = (wp - kw) // s + 1

    # --- row tiling: largest divisor of Ho <= row_tile whose activation tile fits budget ---
    x_budget = 8 << 20                                    # per-buffer activation bytes
    th = 1
    for d in range(1, min(row_tile, ho) + 1):
        if ho % d == 0:
            rows = (d - 1) * s + kh if d == ho else d * s
            if rows * wp * cin * itemsize <= x_budget:
                th = d
    nr = ho // th
    halo = max(kh - s, 0)                                  # rows needed past a th*s block

    if nr == 1:
        # Single row tile: main block covers the full padded height -> no halo stream.
        hblk, use_halo, halo_rows, hb = hp, False, 0, 0
        h_total = hp
    else:
        hblk = th * s
        use_halo = halo > 0
        halo_rows = halo if use_halo else 0
        if use_halo:
            hb = 8 if ((th * s) % 8 == 0 and halo <= 8) else th * s
            assert hb >= halo, (hb, halo)
            h_total = max(nr * th * s + hb, hp)
        else:
            hb = 0
            h_total = max(nr * th * s, hp)

    # --- cout tiling: 256-wide tiles when possible (full MXU N on v6e/v7x), lane-dense ---
    if cout_tile is None:
        tc = 256 if (-(-cout // 128) * 128) >= 256 else 128
    else:
        tc = int(cout_tile)
    cout_pad = -(-cout // tc) * tc
    nc = cout_pad // tc

    # --- one-time parameter rearrangement (outside the kernel) ---
    k_dim = kh * kw * cin
    w2 = weight_hwio.reshape(k_dim, cout).astype(jnp.float32)
    if use_normalization:
        scale = bn_scale.astype(jnp.float32)
        shift = bn_shift.astype(jnp.float32)
        w2 = w2 * scale[None, :]                           # fold BN scale into the weight
    else:
        shift = (bias.astype(jnp.float32) if bias is not None
                 else jnp.zeros((cout,), jnp.float32))
    w2 = w2.astype(compute_dtype)
    shift2 = shift.reshape(1, cout)
    if cout_pad != cout:
        w2 = jnp.pad(w2, ((0, 0), (0, cout_pad - cout)))
        shift2 = jnp.pad(shift2, ((0, 0), (0, cout_pad - cout)))

    # Spatial zero-pad (TF-SAME + extra bottom rows so every block is in range), bf16 cast.
    x_p = jnp.pad(x, ((0, 0), (pt, h_total - h - pt), (pleft, pright), (0, 0)))
    x_p = x_p.astype(compute_dtype)

    # --- grid ordering: weight-stationary when the weight tile dominates HBM traffic ---
    x_bytes = hblk * wp * cin * itemsize + (hb * wp * cin * itemsize if use_halo else 0)
    w_bytes = k_dim * tc * itemsize
    c_outer = (nc > 1) and (n * nr > 1) and (w_bytes > x_bytes)
    step = ((th * s) // hb) if use_halo else 0

    if c_outer:
        grid = (nc, n, nr)
        x_map = lambda c, b, r: (b, r, 0, 0)
        xh_map = lambda c, b, r: (b, (r + 1) * step, 0, 0)
        w_map = lambda c, b, r: (0, c)
        v_map = lambda c, b, r: (0, c)
        o_map = lambda c, b, r: (b, r, 0, c)
    else:
        grid = (n, nr, nc)
        x_map = lambda b, r, c: (b, r, 0, 0)
        xh_map = lambda b, r, c: (b, (r + 1) * step, 0, 0)
        w_map = lambda b, r, c: (0, c)
        v_map = lambda b, r, c: (0, c)
        o_map = lambda b, r, c: (b, r, 0, c)

    in_specs = [pl.BlockSpec((1, hblk, wp, cin), x_map)]
    inputs = [x_p]
    if use_halo:
        in_specs.append(pl.BlockSpec((1, hb, wp, cin), xh_map))
        inputs.append(x_p)                                 # second (halo) view, same array
    in_specs += [pl.BlockSpec((k_dim, tc), w_map),
                 pl.BlockSpec((1, tc), v_map)]
    inputs += [w2, shift2]
    out_specs = pl.BlockSpec((1, th, wo, tc), o_map)

    # --- activation resolution ---
    if use_activation:
        act = use_activation if isinstance(use_activation, str) else "relu6"
        if act not in ("relu6", "relu"):
            raise NotImplementedError(f"activation {act!r} not supported")
    else:
        act = None

    # --- VMEM limit derived from the actual double-buffered footprint ---
    out_itemsize = jnp.dtype(out_dtype).itemsize
    vmem_needed = 2 * (x_bytes + w_bytes + tc * 4 + th * wo * tc * out_itemsize)
    vmem_limit = int(min(max(vmem_needed + (4 << 20), 16 << 20), 100 << 20))

    kernel = functools.partial(
        _conv_bn_act_kernel, kh=kh, kw=kw, stride=s, th=th, halo=halo_rows, act=act)

    out = pl.pallas_call(
        kernel,
        out_shape=jax.ShapeDtypeStruct((n, ho, wo, cout_pad), out_dtype),
        grid=grid,
        in_specs=in_specs,
        out_specs=out_specs,
        compiler_params=pltpu.CompilerParams(
            dimension_semantics=("parallel", "parallel", "parallel"),
            vmem_limit_bytes=vmem_limit),
    )(*inputs)

    if cout_pad != cout:
        out = out[..., :cout]    # a fused NHWC stack would keep the padded channels
    return out


def mobilenet_v1_conv_layer(features_nchw, weight_hwio, bn_scale=None, bn_shift=None,
                            **kwargs):
    """Torch-compat wrapper: NCHW in / NCHW out.  (In a fully-NHWC MobileNet stack these
    two transposes -- extra HBM passes per layer -- disappear.)"""
    x = jnp.transpose(features_nchw, (0, 2, 3, 1))
    y = mobilenet_v1_conv_nhwc(x, weight_hwio, bn_scale, bn_shift, **kwargs)
    return jnp.transpose(y, (0, 3, 1, 2))


# ----------------------------------------------------------------------------- reference
def _tf_same_pad_amounts(h, w, kh, kw, s):
    pad_h = max(kh - s, 0) if h % s == 0 else max(kh - h % s, 0)
    pad_w = max(kw - s, 0) if w % s == 0 else max(kw - w % s, 0)
    return pad_h // 2, pad_h - pad_h // 2, pad_w // 2, pad_w - pad_w // 2


def _reference(x_nchw, w_hwio, scale, shift, stride):
    kh, kw = w_hwio.shape[0], w_hwio.shape[1]
    h, w = x_nchw.shape[2], x_nchw.shape[3]
    pt, pb, pleft, pright = _tf_same_pad_amounts(h, w, kh, kw, stride)
    x = jnp.transpose(x_nchw, (0, 2, 3, 1))
    x = jnp.pad(x, ((0, 0), (pt, pb), (pleft, pright), (0, 0)))
    y = lax.conv_general_dilated(x, w_hwio, (stride, stride), "VALID",
                                 dimension_numbers=("NHWC", "HWIO", "NHWC"))
    y = jnp.clip(y * scale + shift, 0.0, 6.0)
    return jnp.transpose(y, (0, 3, 1, 2))


if __name__ == "__main__":
    EPS = 1e-3
    key = jax.random.PRNGKey(0)

    def fold_bn(gamma, beta, mean, var):
        scale = gamma * lax.rsqrt(var + EPS)
        return scale, beta - mean * scale

    # --- Test 1: 3x3 conv, stride 1, tf_padding, BN + relu6 (stem-style, small shapes) ---
    N, CIN, COUT, H, W, K, STRIDE = 2, 4, 8, 16, 16, 3, 1
    k_x, k_w, k_g, k_b, k_m, k_v, k_x2, k_w2, k_x4, k_w4 = jax.random.split(key, 10)
    x1 = jax.random.normal(k_x, (N, CIN, H, W), jnp.float32)
    w1 = 0.1 * jax.random.normal(k_w, (K, K, CIN, COUT), jnp.float32)
    gamma = 1.0 + 0.1 * jax.random.normal(k_g, (COUT,), jnp.float32)
    beta = 0.1 * jax.random.normal(k_b, (COUT,), jnp.float32)
    mean = 0.1 * jax.random.normal(k_m, (COUT,), jnp.float32)
    var = jnp.abs(jax.random.normal(k_v, (COUT,), jnp.float32)) + 0.5
    sc1, sh1 = fold_bn(gamma, beta, mean, var)
    ref1 = _reference(x1, w1, sc1, sh1, STRIDE)

    # 1a: strict-accuracy f32 path
    out1 = mobilenet_v1_conv_layer(x1, w1, sc1, sh1, stride=STRIDE,
                                   compute_dtype=jnp.float32)
    out1 = jax.block_until_ready(out1)
    assert out1.shape == (N, COUT, H, W), out1.shape
    assert jnp.allclose(out1, ref1, atol=1e-4, rtol=1e-4)

    # 1b: default bf16 MXU path (production)
    out1b = jax.block_until_ready(mobilenet_v1_conv_layer(x1, w1, sc1, sh1, stride=STRIDE))
    assert jnp.allclose(out1b, ref1, atol=5e-2, rtol=5e-2)

    # --- Test 2: 1x1 pointwise conv, stride 1 (MobileNetV1 pointwise-style), bf16 path ---
    CIN2, COUT2 = 8, 16
    x2 = jax.random.normal(k_x2, (N, CIN2, H, W), jnp.float32)
    w2 = 0.1 * jax.random.normal(k_w2, (1, 1, CIN2, COUT2), jnp.float32)
    sc2 = jnp.ones((COUT2,), jnp.float32)
    sh2 = jnp.zeros((COUT2,), jnp.float32)
    out2 = jax.block_until_ready(mobilenet_v1_conv_layer(x2, w2, sc2, sh2, stride=1))
    ref2 = _reference(x2, w2, sc2, sh2, 1)
    assert out2.shape == (N, COUT2, H, W), out2.shape
    assert jnp.allclose(out2, ref2, atol=3e-2, rtol=3e-2)

    # --- Test 3: force multiple row tiles (exercises the halo path), f32 strict ---
    out3 = jax.block_until_ready(
        mobilenet_v1_conv_layer(x1, w1, sc1, sh1, stride=STRIDE, row_tile=8,
                                compute_dtype=jnp.float32))
    assert jnp.allclose(out3, ref1, atol=1e-4, rtol=1e-4)

    # --- Test 4: high-Cout 3x3 (exercises 256-wide tiles + weight-stationary grid), f32 ---
    CIN4, COUT4, H4 = 8, 512, 8
    x4 = jax.random.normal(k_x4, (N, CIN4, H4, H4), jnp.float32)
    w4 = 0.1 * jax.random.normal(k_w4, (3, 3, CIN4, COUT4), jnp.float32)
    sc4 = jnp.ones((COUT4,), jnp.float32)
    sh4 = 0.01 * jnp.ones((COUT4,), jnp.float32)
    out4 = jax.block_until_ready(
        mobilenet_v1_conv_layer(x4, w4, sc4, sh4, stride=1, compute_dtype=jnp.float32))
    ref4 = _reference(x4, w4, sc4, sh4, 1)
    assert out4.shape == (N, COUT4, H4, H4), out4.shape
    assert jnp.allclose(out4, ref4, atol=1e-4, rtol=1e-4)

    print("KERNEL_OK")
</pallas_src>

<mosaic_0001>
module attributes {stable_mosaic.version = 11 : i64} {
  func.func @_conv_bn_act_kernel(%arg0: i32, %arg1: i32, %arg2: i32, %arg3: memref<1x18x18x4xf32, #tpu.memory_space<vmem>>, %arg4: memref<36x128xf32, #tpu.memory_space<vmem>>, %arg5: memref<1x128xf32, #tpu.memory_space<vmem>>, %arg6: memref<1x16x16x128xf32, #tpu.memory_space<vmem>>) attributes {dimension_semantics = [#tpu.dimension_semantics<parallel>, #tpu.dimension_semantics<parallel>, #tpu.dimension_semantics<parallel>], iteration_bounds = array<i64: 2, 1, 1>, scalar_prefetch = 0 : i64, scratch_operands = 0 : i64, tpu.core_type = #tpu.core_type<tc>, window_params = [{transform_indices = @transform_0, window_bounds = array<i64: 1, 18, 18, 4>}, {transform_indices = @transform_1, window_bounds = array<i64: 36, 128>}, {transform_indices = @transform_2, window_bounds = array<i64: 1, 128>}, {transform_indices = @transform_3, window_bounds = array<i64: 1, 16, 16, 128>}]} {
    %c0 = arith.constant 0 : index
    %c0_0 = arith.constant 0 : index
    %c0_1 = arith.constant 0 : index
    %c0_2 = arith.constant 0 : index
    %0 = vector.load %arg3[%c0, %c0_0, %c0_1, %c0_2] : memref<1x18x18x4xf32, #tpu.memory_space<vmem>>, vector<1x18x18x4xf32>
    %1 = vector.shape_cast %0 : vector<1x18x18x4xf32> to vector<18x18x4xf32>
    %2 = vector.extract_strided_slice %1 {offsets = [0, 0, 0], sizes = [16, 16, 4], strides = [1, 1, 1]} : vector<18x18x4xf32> to vector<16x16x4xf32>
    %3 = vector.extract_strided_slice %1 {offsets = [0, 1, 0], sizes = [16, 16, 4], strides = [1, 1, 1]} : vector<18x18x4xf32> to vector<16x16x4xf32>
    %4 = vector.extract_strided_slice %1 {offsets = [0, 2, 0], sizes = [16, 16, 4], strides = [1, 1, 1]} : vector<18x18x4xf32> to vector<16x16x4xf32>
    %5 = vector.extract_strided_slice %1 {offsets = [1, 0, 0], sizes = [16, 16, 4], strides = [1, 1, 1]} : vector<18x18x4xf32> to vector<16x16x4xf32>
    %6 = vector.extract_strided_slice %1 {offsets = [1, 1, 0], sizes = [16, 16, 4], strides = [1, 1, 1]} : vector<18x18x4xf32> to vector<16x16x4xf32>
    %7 = vector.extract_strided_slice %1 {offsets = [1, 2, 0], sizes = [16, 16, 4], strides = [1, 1, 1]} : vector<18x18x4xf32> to vector<16x16x4xf32>
    %8 = vector.extract_strided_slice %1 {offsets = [2, 0, 0], sizes = [16, 16, 4], strides = [1, 1, 1]} : vector<18x18x4xf32> to vector<16x16x4xf32>
    %9 = vector.extract_strided_slice %1 {offsets = [2, 1, 0], sizes = [16, 16, 4], strides = [1, 1, 1]} : vector<18x18x4xf32> to vector<16x16x4xf32>
    %10 = vector.extract_strided_slice %1 {offsets = [2, 2, 0], sizes = [16, 16, 4], strides = [1, 1, 1]} : vector<18x18x4xf32> to vector<16x16x4xf32>
    %11 = tpu.concatenate %2, %3, %4, %5, %6, %7, %8, %9, %10 in 2 : vector<16x16x4xf32>, vector<16x16x4xf32>, vector<16x16x4xf32>, vector<16x16x4xf32>, vector<16x16x4xf32>, vector<16x16x4xf32>, vector<16x16x4xf32>, vector<16x16x4xf32>, vector<16x16x4xf32> -> vector<16x16x36xf32>
    %12 = vector.shape_cast %11 : vector<16x16x36xf32> to vector<256x36xf32>
    %c0_3 = arith.constant 0 : index
    %c0_4 = arith.constant 0 : index
    %13 = vector.load %arg4[%c0_3, %c0_4] : memref<36x128xf32, #tpu.memory_space<vmem>>, vector<36x128xf32>
    %cst = arith.constant dense<0.000000e+00> : vector<256x128xf32>
    %14 = tpu.matmul %12, %13, %cst {dimension_numbers = #tpu.dot_dimension_numbers<[1], [0], [0], [1], [0, 0, 1, 1], [], []>} : vector<256x36xf32>, vector<36x128xf32>, vector<256x128xf32> -> vector<256x128xf32>
    %c0_5 = arith.constant 0 : index
    %c0_6 = arith.constant 0 : index
    %15 = vector.load %arg5[%c0_5, %c0_6] : memref<1x128xf32, #tpu.memory_space<vmem>>, vector<1x128xf32>
    %16 = vector.broadcast %15 : vector<1x128xf32> to vector<256x128xf32>
    %17 = arith.addf %14, %16 : vector<256x128xf32>
    %cst_7 = arith.constant 0.000000e+00 : f32
    %cst_8 = arith.constant 6.000000e+00 : f32
    %18 = vector.broadcast %cst_7 : f32 to vector<256x128xf32>
    %19 = arith.maximumf %18, %17 : vector<256x128xf32>
    %20 = vector.broadcast %cst_8 : f32 to vector<256x128xf32>
    %21 = arith.minimumf %20, %19 : vector<256x128xf32>
    %22 = vector.shape_cast %21 : vector<256x128xf32> to vector<16x16x128xf32>
    %c0_9 = arith.constant 0 : index
    %c0_10 = arith.constant 0 : index
    %c0_11 = arith.constant 0 : index
    %c0_12 = arith.constant 0 : index
    %23 = vector.load %arg6[%c0_9, %c0_10, %c0_11, %c0_12] : memref<1x16x16x128xf32, #tpu.memory_space<vmem>>, vector<1x16x16x128xf32>
    %24 = vector.shape_cast %23 : vector<1x16x16x128xf32> to vector<16x16x128xf32>
    %25 = vector.shape_cast %22 : vector<16x16x128xf32> to vector<1x16x16x128xf32>
    tpu.vector_store %arg6[%c0_9, %c0_10, %c0_11, %c0_12], %25 {strides = array<i32>} : memref<1x16x16x128xf32, #tpu.memory_space<vmem>>, vector<1x16x16x128xf32>,
    return
  }
  func.func @transform_0(%arg0: i32, %arg1: i32, %arg2: i32) -> (i32, i32, i32, i32) {
    %c0_i32 = arith.constant 0 : i32
    %c0_i32_0 = arith.constant 0 : i32
    %c0_i32_1 = arith.constant 0 : i32
    return %arg0, %arg1, %c0_i32, %c0_i32_0 : i32, i32, i32, i32
  }
  func.func @transform_1(%arg0: i32, %arg1: i32, %arg2: i32) -> (i32, i32) {
    %c0_i32 = arith.constant 0 : i32
    %c0_i32_0 = arith.constant 0 : i32
    return %c0_i32, %arg2 : i32, i32
  }
  func.func @transform_2(%arg0: i32, %arg1: i32, %arg2: i32) -> (i32, i32) {
    %c0_i32 = arith.constant 0 : i32
    %c0_i32_0 = arith.constant 0 : i32
    return %c0_i32, %arg2 : i32, i32
  }
  func.func @transform_3(%arg0: i32, %arg1: i32, %arg2: i32) -> (i32, i32, i32, i32) {
    %c0_i32 = arith.constant 0 : i32
    %c0_i32_0 = arith.constant 0 : i32
    return %arg0, %arg1, %c0_i32, %arg2 : i32, i32, i32, i32
  }
}

</mosaic_0001>

<bundles_post_ra>
// kernel: tpu_custom_call.1
= control target key start
LH: loop header
LB: loop body
LE: loop exit
PB: predicated region body
PF: predicated region fallthrough
CT: control target
= control target key end

     0   :  { %8 = vsyncpa [#allocation3], 0  ;;  %s4341_s0 = inlined_call_operand.vmem [shape: f32[2,18,18,4], index: 0, kind: input, shape index: {}]   ;;  %s4342_s1 = inlined_call_operand.vmem [shape: f32[36,128], index: 1, kind: input, shape index: {}]   ;;  %s4343_s2 = inlined_call_operand.vmem [shape: f32[1,128], index: 2, kind: input, shape index: {}]   ;;  %s4344_s3 = inlined_call_operand.hbm [shape: f32[2,16,16,128], index: 3, kind: output, shape index: {}]  }
   0x1   :  { %10 = vsyncpa [#allocation3 + $0x1], 0  ;;  %s2477_s12 = smov 0   ;;  %s2479_s13 = smov 0  }
   0x2   :  { %s2481_s14 = smov 0   ;;  %s2483_s15 = smov 0  }
   0x3   :  { %s2485_s16 = smov 0   ;;  %s2487_s17 = smov 0  }
   0x4 LB: > { %s2130_s18 = sadd.s32 4294967295, %s2445_s17   ;;  %s2131_s19 = sadd.s32 4294967294, %s2445_s17   ;;  %s2445_s17 = sphi %s2487_s17, %s16_s17   ;;  %s2441_s16 = sphi %s2485_s16, %s4628_s16   ;;  %s2437_s15 = sphi %s2483_s15, %s4627_s15   ;;  %s2433_s14 = sphi %s2481_s14, %s4626_s14   ;;  %s2429_s13 = sphi %s2479_s13, %s4625_s13   ;;  %s2425_s12 = sphi %s2477_s12, %s4624_s12  }
   0x5   : > { %s35_s20 = sadd.s32 1, %s2441_s16  ;;  %s126_s21 = sadd.s32 1, %s2433_s14 }
   0x6   : > { %p37_p0 = scmp.ge.s32.totalorder %s35_s20, 2  ;;  %p136_p1 = scmp.ne.s32.totalorder %s2433_s14, %s2429_s13 }
   0x7   : > { %p137_p2 = scmp.eq.s32.totalorder %s2130_s18, 1  ;;  %p142_p3 = scmp.ne.s32.totalorder %s2429_s13, %s2425_s12 }
   0x8   : > { %s4630_s20 = smov (%p37_p0, %s35_s20), 0  ;;  %p143_p5 = scmp.eq.s32.totalorder %s2131_s19, 1 }
   0x9   : > { %p2517_p4 = por %p137_p2, %p136_p1  ;;  %s119_s23 = ssub.s32 %s2441_s16, %s4630_s20 }
   0xa   : > { %p2136_p6 = scmp.ge.s32.totalorder %s2445_s17, 1  ;;  %p124_p7 = scmp.eq.s32.totalorder %s119_s23, 0 }
   0xb   : > { %p2524_p8 = por %p143_p5, %p142_p3  ;;  %p188_p9 = scmp.lt.s32.totalorder %s2445_s17, 3 }
   0xc   : > { %s2530_s25 = scalar_select %p124_p7, %s2433_s14, %s126_s21  }
   0xd   : > { %p189_p10 = pnand %p2136_p6, %p188_p9 }
   0xf   : > { %192 = sbr.rel (%p189_p10) target bundleno = 871 (0x367), region = 32 }
  0x14   : > { %p225_p11 = scmp.lt.s32.totalorder %s2437_s15, 1  ;;  %vm345_vm0 = vcmask 1046528   ;;  %s2447_s4 = smov 4   ;;  %vm522_vm1 = vcmask 1045504   ;;  %vm1301_vm2 = vcmask 31744   ;;  %vm1334_vm3 = vcmask 64512  }
  0x15   : > { %s2448_s5 = smov 8   ;;  %s2449_s6 = smov 12   ;;  %vm1674_vm4 = vcmask 1043456   ;;  %vm1367_vm5 = vcmask 97280   ;;  %vm1400_vm6 = vcmask 130048   ;;  %vm1433_vm7 = vcmask 162816  }
  0x16   : > { %s226_s26 = scalar_select %p225_p11, %s2437_s15, 1  ;;  %vm1466_vm8 = vcmask 195584   ;;  %vm1499_vm9 = vcmask 228352   ;;  %vm1532_vm10 = vcmask 261120   ;;  %vm1577_vm11 = vcmask 293888  }
  0x17   : > { %s2450_s7 = smov 16   ;;  %s2451_s8 = smov 20  }
  0x18   : > { %s2284_s27 = smul.u32 432, %s226_s26  ;;  %s2452_s9 = smov 24  }
  0x19   : > { %s2453_s21 = smov 28   ;;  %s2178_s11 = sshll.u32 %s2437_s15, 12 }
  0x1a   : > { %s2537_s30 = scalar_lea.vmem %s4341_s0, %s2284_s27  ;;  %s4286_s23 = scalar_lea.hbm %s4344_s3, %s2178_s11 }
  0x1b   : > { %v2540_v0 = vld [vmem:[%s2537_s30 + $0x18] sm:$0xff]  ;;  %v2543_v1 = vld [vmem:[%s2537_s30 + $0x20] sm:$0xff]  ;;  %v2551_v5 = vld [vmem:[%s2537_s30 + $0x8] sm:$0xff]  ;;  %s2455_s27 = smov [#allocation2]  }
  0x1c   : > { %v2546_v2 = vld [vmem:[%s2537_s30] sm:$0xff]  ;;  %v351_v3 = vrot.slane %v2540_v0, 1  ;;  %v352_v4 = vrot.slane %v2543_v1, 1  ;;  %v2555_v7 = vld [vmem:[%s2537_s30 + $0x28] sm:$0x3]  ;;  %v347_v8 = vrot.slane %v2551_v5, 1 }
  0x1d   : > { %v346_v6 = vrot.slane %v2546_v2, 1  ;;  %v354_v9 = vrot.slane %v2555_v7, 1  ;;  %v2560_v10 = vld [vmem:[%s2537_s30 + $0x10] sm:$0x3]  ;;  %v2563_v11 = vld [vmem:[%s2537_s30 + $0x38] sm:$0xff]  ;;  %v2593_v24 = vld [vmem:[%s2537_s30 + $0x48] sm:$0xff] }
  0x1e   : > { %v2566_v12 = vsel %vm345_vm0, %v351_v3, %v352_v4  ;;  %v349_v13 = vrot.slane %v2560_v10, 1  ;;  %v2570_v14 = vld [vmem:[%s2537_s30 + $0x40] sm:$0x3]  ;;  %v2573_v15 = vld [vmem:[%s2537_s30 + $0x30] sm:$0xff]  ;;  %v357_v18 = vrot.slane %v2563_v11, 1  ;;  %v361_v29 = vrot.slane %v2593_v24, 1 }
  0x1f   : > { %430 = vrot.lane.b32.xlu1 %v2566_v12, %s2447_s4  ;;  %v348_v16 = vsel %vm345_vm0, %v346_v6, %v347_v8  ;;  %v2580_v17 = vsel %vm345_vm0, %v352_v4, %v354_v9  ;;  %v359_v19 = vrot.slane %v2570_v14, 1  ;;  %v356_v21 = vrot.slane %v2573_v15, 1  ;;  %v2587_v22 = vld [vmem:[%s2537_s30 + $0x50] sm:$0xff]  ;;  %v2590_v23 = vld [vmem:[%s2537_s30 + $0x58] sm:$0x3]  ;;  %v2608_v30 = vld [vmem:[%s2537_s30 + $0x68] sm:$0xff] }
  0x20   : > { %426 = vrot.lane.b32.xlu0 %v348_v16, %s2447_s4  ;;  %v350_v20 = vsel %vm345_vm0, %v347_v8, %v349_v13  ;;  %v362_v26 = vrot.slane %v2587_v22, 1  ;;  %v364_v27 = vrot.slane %v2590_v23, 1  ;;  %v2611_v31 = vld [vmem:[%s2537_s30 + $0x70] sm:$0x3]  ;;  %v2614_v32 = vld [vmem:[%s2537_s30 + $0x60] sm:$0xff]  ;;  %v367_v34 = vrot.slane %v2608_v30, 1 }
  0x21   : > { %v2599_v25 = vsel %vm345_vm0, %v357_v18, %v359_v19  ;;  %v2604_v28 = vsel %vm345_vm0, %v356_v21, %v357_v18  ;;  %v369_v35 = vrot.slane %v2611_v31, 1  ;;  %v366_v37 = vrot.slane %v2614_v32, 1  ;;  %v2630_v38 = vld [vmem:[%s2537_s30 + $0x80] sm:$0xff]  ;;  %v2633_v39 = vld [vmem:[%s2537_s30 + $0x88] sm:$0x3]  ;;  %v2636_v40 = vld [vmem:[%s2537_s30 + $0x78] sm:$0xff] }
  0x22   : > { %v2621_v33 = vsel %vm345_vm0, %v362_v26, %v364_v27  ;;  %v2626_v36 = vsel %vm345_vm0, %v361_v29, %v362_v26  ;;  %v372_v42 = vrot.slane %v2630_v38, 1  ;;  %v374_v43 = vrot.slane %v2633_v39, 1  ;;  %v2652_v46 = vld [vmem:[%s2537_s30 + $0x98] sm:$0xff]  ;;  %v2655_v47 = vld [vmem:[%s2537_s30 + $0xa0] sm:$0x3]  ;;  %v2658_v48 = vld [vmem:[%s2537_s30 + $0x90] sm:$0xff] }
  0x23   : > { %432 = vrot.lane.b32.xlu1 %v2580_v17, %s2447_s4  ;;  %4454 = vst [vmem:[#allocation5_spill] sm:$0xff] %v2626_v36  ;;  %v2643_v41 = vsel %vm345_vm0, %v367_v34, %v369_v35  ;;  %v2648_v44 = vsel %vm345_vm0, %v366_v37, %v367_v34  ;;  %v371_v45 = vrot.slane %v2636_v40, 1  ;;  %v377_v50 = vrot.slane %v2652_v46, 1  ;;  %v2674_v54 = vld [vmem:[%s2537_s30 + $0xb0] sm:$0xff]  ;;  %v2677_v55 = vld [vmem:[%s2537_s30 + $0xb8] sm:$0x3] }
  0x24   : > { %428 = vrot.lane.b32.xlu0 %v350_v20, %s2447_s4  ;;  %4455 = vst [vmem:[#allocation6_spill] sm:$0xff] %v2643_v41  ;;  %4456 = vst [vmem:[#allocation7_spill] sm:$0xff] %v2648_v44  ;;  %v2665_v49 = vsel %vm345_vm0, %v372_v42, %v374_v43  ;;  %v379_v51 = vrot.slane %v2655_v47, 1  ;;  %v376_v53 = vrot.slane %v2658_v48, 1  ;;  %v2680_v56 = vld [vmem:[%s2537_s30 + $0xa8] sm:$0xff]  ;;  %v382_v58 = vrot.slane %v2674_v54, 1 }
  0x25   : > { %4457 = vst [vmem:[#allocation8_spill] sm:$0xff] %v2665_v49  ;;  %v2670_v52 = vsel %vm345_vm0, %v371_v45, %v372_v42  ;;  %v384_v59 = vrot.slane %v2677_v55, 1  ;;  %v381_v61 = vrot.slane %v2680_v56, 1  ;;  %v2696_v62 = vld [vmem:[%s2537_s30 + $0xc8] sm:$0xff]  ;;  %v2699_v63 = vld [vmem:[%s2537_s30 + $0xd0] sm:$0x3] }
  0x26   : > { %4458 = vst [vmem:[#allocation9_spill] sm:$0xff] %v2670_v52  ;;  %v2687_v57 = vsel %vm345_vm0, %v377_v50, %v379_v51  ;;  %v2692_v60 = vsel %vm345_vm0, %v376_v53, %v377_v50  ;;  %v2702_v3 = vld [vmem:[%s2537_s30 + $0xc0] sm:$0xff]  ;;  %v387_v6 = vrot.slane %v2696_v62, 1  ;;  %v389_v8 = vrot.slane %v2699_v63, 1  ;;  %v2721_v18 = vld [vmem:[%s2537_s30 + $0xe8] sm:$0x3] }
  0x27   : > { %436 = vrot.lane.b32.xlu1 %v2599_v25, %s2447_s4  ;;  %4459 = vst [vmem:[#allocation10_spill] sm:$0xff] %v2687_v57  ;;  %4460 = vst [vmem:[#allocation11_spill] sm:$0xff] %v2692_v60  ;;  %v2709_v4 = vsel %vm345_vm0, %v382_v58, %v384_v59  ;;  %v2714_v9 = vsel %vm345_vm0, %v381_v61, %v382_v58  ;;  %v386_v13 = vrot.slane %v2702_v3, 1  ;;  %v2718_v16 = vld [vmem:[%s2537_s30 + $0xe0] sm:$0xff]  ;;  %v2724_v19 = vld [vmem:[%s2537_s30 + $0xd8] sm:$0xff]  ;;  %v394_v26 = vrot.slane %v2721_v18, 1 }
  0x28   : > { %434 = vrot.lane.b32.xlu0 %v2604_v28, %s2447_s4  ;;  %4461 = vst [vmem:[#allocation12_spill] sm:$0xff] %v2709_v4  ;;  %4462 = vst [vmem:[#allocation13_spill] sm:$0xff] %v2714_v9  ;;  %v2731_v20 = vsel %vm345_vm0, %v387_v6, %v389_v8  ;;  %v392_v21 = vrot.slane %v2718_v16, 1  ;;  %v391_v29 = vrot.slane %v2724_v19, 1  ;;  %v2740_v34 = vld [vmem:[%s2537_s30 + $0xf8] sm:$0xff]  ;;  %v2746_v37 = vld [vmem:[%s2537_s30 + $0xf0] sm:$0xff] }
  0x29   : > { %4463 = vst [vmem:[#allocation14_spill] sm:$0xff] %v2731_v20  ;;  %v2736_v27 = vsel %vm345_vm0, %v386_v13, %v387_v6  ;;  %v2743_v35 = vld [vmem:[%s2537_s30 + $0x100] sm:$0x3]  ;;  %v397_v43 = vrot.slane %v2740_v34, 1  ;;  %v396_v51 = vrot.slane %v2746_v37, 1  ;;  %v2762_v53 = vld [vmem:[%s2537_s30 + $0x110] sm:$0xff] }
  0x2a   : > { %4464 = vst [vmem:[#allocation15_spill] sm:$0xff] %v2736_v27  ;;  %v2753_v42 = vsel %vm345_vm0, %v392_v21, %v394_v26  ;;  %v399_v45 = vrot.slane %v2743_v35, 1  ;;  %v2758_v50 = vsel %vm345_vm0, %v391_v29, %v392_v21  ;;  %v2765_v58 = vld [vmem:[%s2537_s30 + $0x118] sm:$0x3]  ;;  %v2768_v59 = vld [vmem:[%s2537_s30 + $0x108] sm:$0xff]  ;;  %v402_v6 = vrot.slane %v2762_v53, 1 }
  0x2b   : > { %440 = vrot.lane.b32.xlu1 %v2621_v33, %s2447_s4  ;;  %4465 = vst [vmem:[#allocation16_spill] sm:$0xff] %v2753_v42  ;;  %4466 = vst [vmem:[#allocation17_spill] sm:$0xff] %v2758_v50  ;;  %v404_v8 = vrot.slane %v2765_v58, 1  ;;  %v2780_v13 = vsel %vm345_vm0, %v396_v51, %v397_v43  ;;  %v401_v21 = vrot.slane %v2768_v59, 1  ;;  %v2784_v26 = vld [vmem:[%s2537_s30 + $0x128] sm:$0xff]  ;;  %s2373_s28 = sshll.u32 %s2455_s27, 4  ;;  %s2374_s28 = int_to_ptr.vmem [resolvable:$false] %s2373_s28 }
  0x2c   : > { %438 = vrot.lane.b32.xlu0 %v2626_v36, %s2447_s4  ;;  %v2775_v61 = vsel %vm345_vm0, %v397_v43, %v399_v45  ;;  %4468 = vst [vmem:[#allocation19_spill] sm:$0xff] %v2780_v13  ;;  %v2787_v29 = vld [vmem:[%s2537_s30 + $0x130] sm:$0x3]  ;;  %v407_v43 = vrot.slane %v2784_v26, 1  ;;  %s2375_s29 = scalar_lea.vmem %s2374_s28, 8192 }
  0x2d   : > { %4467 = vst [vmem:[#allocation18_spill] sm:$0xff] %v2775_v61  ;;  %v2797_v45 = vsel %vm345_vm0, %v402_v6, %v404_v8  ;;  %v409_v51 = vrot.slane %v2787_v29, 1 }
  0x2e   : > { %4469 = vst [vmem:[#allocation20_spill] sm:$0xff] %v2797_v45 }
  0x2f   : > { %444 = vrot.lane.b32.xlu1 %v2643_v41, %s2447_s4  ;;  %v2819_v8 = vsel %vm345_vm0, %v407_v43, %v409_v51 }
  0x30   : > { %442 = vrot.lane.b32.xlu0 %v2648_v44, %s2447_s4  ;;  %4471 = vst [vmem:[#allocation22_spill] sm:$0xff] %v2819_v8  ;;  %v2853_v44 = vld [vmem:[%s2537_s30 + $0x178] sm:$0x3] }
  0x33   : > { %448 = vrot.lane.b32.xlu1 %v2665_v49, %s2447_s4  ;;  %v2850_v49 = vld [vmem:[%s2537_s30 + $0x170] sm:$0xff] }
  0x34   : > { %446 = vrot.lane.b32.xlu0 %v2670_v52, %s2447_s4 }
  0x37   : > { %452 = vrot.lane.b32.xlu1 %v2687_v57, %s2447_s4 }
  0x38   : > { %450 = vrot.lane.b32.xlu0 %v2692_v60, %s2447_s4  ;;  %v2828_v60 = vld [vmem:[%s2537_s30 + $0x158] sm:$0xff] }
  0x3b   : > { %456 = vrot.lane.b32.xlu1 %v2709_v4, %s2447_s4 }
  0x3c   : > { %454 = vrot.lane.b32.xlu0 %v2714_v9, %s2447_s4 }
  0x3f   : > { %460 = vrot.lane.b32.xlu1 %v2731_v20, %s2447_s4  ;;  %v2790_v20 = vld [vmem:[%s2537_s30 + $0x120] sm:$0xff] }
  0x40   : > { %458 = vrot.lane.b32.xlu0 %v2736_v27, %s2447_s4  ;;  %v2802_v27 = vsel %vm345_vm0, %v401_v21, %v402_v6  ;;  %v406_v4 = vrot.slane %v2790_v20, 1 }
  0x41   : > { %4470 = vst [vmem:[#allocation21_spill] sm:$0xff] %v2802_v27 }
  0x42   : > { %v2824_v9 = vsel %vm345_vm0, %v406_v4, %v407_v43  ;;  %v417_v4 = vrot.slane %v2828_v60, 1 }
  0x43   : > { %464 = vrot.lane.b32.xlu1 %v2753_v42, %s2447_s4  ;;  %v2806_v42 = vld [vmem:[%s2537_s30 + $0x140] sm:$0xff]  ;;  %4472 = vst [vmem:[#allocation23_spill] sm:$0xff] %v2824_v9 }
  0x44   : > { %462 = vrot.lane.b32.xlu0 %v2758_v50, %s2447_s4  ;;  %v412_v6 = vrot.slane %v2806_v42, 1 }
  0x47   : > { %468 = vrot.lane.b32.xlu1 %v2775_v61, %s2447_s4  ;;  %v2809_v61 = vld [vmem:[%s2537_s30 + $0x148] sm:$0x3] }
  0x48   : > { %466 = vrot.lane.b32.xlu0 %v2780_v13, %s2447_s4  ;;  %v2812_v13 = vld [vmem:[%s2537_s30 + $0x138] sm:$0xff]  ;;  %v414_v21 = vrot.slane %v2809_v61, 1 }
  0x49   : > { %v411_v50 = vrot.slane %v2812_v13, 1 }
  0x4a   : > { %v2841_v51 = vsel %vm345_vm0, %v412_v6, %v414_v21 }
  0x4b   : > { %472 = vrot.lane.b32.xlu1 %v2797_v45, %s2447_s4  ;;  %v2831_v45 = vld [vmem:[%s2537_s30 + $0x160] sm:$0x3]  ;;  %4473 = vst [vmem:[#allocation24_spill] sm:$0xff] %v2841_v51  ;;  %v2846_v57 = vsel %vm345_vm0, %v411_v50, %v412_v6  ;;  %v422_v50 = vrot.slane %v2850_v49, 1  ;;  %v424_v6 = vrot.slane %v2853_v44, 1 }
  0x4c   : > { %470 = vrot.lane.b32.xlu0 %v2802_v27, %s2447_s4  ;;  %v2834_v27 = vld [vmem:[%s2537_s30 + $0x150] sm:$0xff]  ;;  %v419_v43 = vrot.slane %v2831_v45, 1  ;;  %4474 = vst [vmem:[#allocation25_spill] sm:$0xff] %v2846_v57 }
  0x4d   : > { %v416_v52 = vrot.slane %v2834_v27, 1 }
  0x4e   : > { %v2863_v21 = vsel %vm345_vm0, %v417_v4, %v419_v43  ;;  %v524_v43 = vrot.slane %v2551_v5, 2  ;;  %v531_v5 = vrot.slane %v2555_v7, 2  ;;  %v533_v7 = vrot.slane %v2573_v15, 2 }
  0x4f   : > { %476 = vrot.lane.b32.xlu1 %v2819_v8, %s2447_s4  ;;  %v2856_v8 = vld [vmem:[%s2537_s30 + $0x168] sm:$0xff]  ;;  %4476 = vst [vmem:[#allocation27_spill] sm:$0xff] %v2863_v21 }
  0x50   : > { %474 = vrot.lane.b32.xlu0 %v2824_v9, %s2447_s4  ;;  %4475 = vst [vmem:[#allocation26_spill] sm:$0xff] %v2856_v8  ;;  %v2868_v9 = vsel %vm345_vm0, %v416_v52, %v417_v4  ;;  %v421_v41 = vrot.slane %v2856_v8, 1  ;;  %v523_v52 = vrot.slane %v2546_v2, 2 }
  0x51   : > { %4477 = vst [vmem:[#allocation28_spill] sm:$0xff] %v2868_v9 }
  0x52   : > { %v2881_v36 = vsel %vm345_vm0, %v421_v41, %v422_v50  ;;  %v528_v41 = vrot.slane %v2540_v0, 2 }
  0x53   : > { %480 = vrot.lane.b32.xlu1 %v2841_v51, %s2447_s4  ;;  %v2876_v51 = vsel %vm345_vm0, %v422_v50, %v424_v6  ;;  %4479 = vst [vmem:[#allocation30_spill] sm:$0xff] %v2881_v36  ;;  %v529_v6 = vrot.slane %v2543_v1, 2  ;;  %v534_v50 = vrot.slane %v2563_v11, 2 }
  0x54   : > { %478 = vrot.lane.b32.xlu0 %v2846_v57, %s2447_s4  ;;  %4478 = vst [vmem:[#allocation29_spill] sm:$0xff] %v2876_v51  ;;  %v526_v57 = vrot.slane %v2560_v10, 2  ;;  %v525_v10 = vsel %vm522_vm1, %v523_v52, %v524_v43  ;;  %v539_v52 = vrot.slane %v2587_v22, 2 }
  0x55   : > { %v2896_v2 = vsel %vm522_vm1, %v529_v6, %v531_v5 }
  0x56   : > { %v527_v4 = vsel %vm522_vm1, %v524_v43, %v526_v57  ;;  %v536_v57 = vrot.slane %v2570_v14, 2  ;;  %v2914_v14 = vsel %vm522_vm1, %v533_v7, %v534_v50  ;;  %v549_v7 = vrot.slane %v2630_v38, 2 }
  0x57   : > { %484 = vrot.lane.b32.xlu1 %v2863_v21, %s2447_s4  ;;  %4481 = vst [vmem:[#allocation32_spill] sm:$0xff] %v2914_v14  ;;  %v561_v21 = vrot.slane %v2677_v55, 2 }
  0x58   : > { %482 = vrot.lane.b32.xlu0 %v2868_v9, %s2447_s4  ;;  %v2909_v43 = vsel %vm522_vm1, %v534_v50, %v536_v57  ;;  %v543_v50 = vrot.slane %v2614_v32, 2  ;;  %v566_v9 = vrot.slane %v2699_v63, 2 }
  0x59   : > { %4480 = vst [vmem:[#allocation31_spill] sm:$0xff] %v2909_v43 }
  0x5b   : > { %488 = vrot.lane.b32.xlu1 %v2876_v51, %s2447_s4  ;;  %v2901_v51 = vsel %vm522_vm1, %v528_v41, %v529_v6  ;;  %v538_v6 = vrot.slane %v2593_v24, 2  ;;  %v546_v41 = vrot.slane %v2611_v31, 2 }
  0x5c   : > { %486 = vrot.lane.b32.xlu0 %v2881_v36, %s2447_s4  ;;  %v556_v36 = vrot.slane %v2655_v47, 2 }
  0x5f   : > { %605 = vrot.lane.b32.xlu1 %v527_v4, %s2448_s5  ;;  %v541_v4 = vrot.slane %v2590_v23, 2  ;;  %v2927_v23 = vsel %vm522_vm1, %v538_v6, %v539_v52 }
  0x60   : > { %603 = vrot.lane.b32.xlu0 %v525_v10, %s2448_s5  ;;  %v544_v10 = vrot.slane %v2608_v30, 2  ;;  %4483 = vst [vmem:[#allocation34_spill] sm:$0xff] %v2927_v23 }
  0x61   : > { %v2922_v5 = vsel %vm522_vm1, %v539_v52, %v541_v4  ;;  %v551_v4 = vrot.slane %v2633_v39, 2  ;;  %v548_v52 = vrot.slane %v2636_v40, 2 }
  0x62   : > { %4482 = vst [vmem:[#allocation33_spill] sm:$0xff] %v2922_v5  ;;  %v2935_v57 = vsel %vm522_vm1, %v544_v10, %v546_v41  ;;  %v2940_v31 = vsel %vm522_vm1, %v543_v50, %v544_v10  ;;  %v554_v41 = vrot.slane %v2652_v46, 2  ;;  %v553_v10 = vrot.slane %v2658_v48, 2 }
  0x63   : > { %609 = vrot.lane.b32.xlu1 %v2896_v2, %s2448_s5  ;;  %4484 = vst [vmem:[#allocation35_spill] sm:$0xff] %v2935_v57  ;;  %4485 = vst [vmem:[#allocation36_spill] sm:$0xff] %v2940_v31  ;;  %v2948_v6 = vsel %vm522_vm1, %v549_v7, %v551_v4  ;;  %v2953_v39 = vsel %vm522_vm1, %v548_v52, %v549_v7  ;;  %v559_v4 = vrot.slane %v2674_v54, 2  ;;  %v558_v7 = vrot.slane %v2680_v56, 2 }
  0x64   : > { %607 = vrot.lane.b32.xlu0 %v2901_v51, %s2448_s5  ;;  %4486 = vst [vmem:[#allocation37_spill] sm:$0xff] %v2948_v6  ;;  %4487 = vst [vmem:[#allocation38_spill] sm:$0xff] %v2953_v39  ;;  %v2961_v50 = vsel %vm522_vm1, %v554_v41, %v556_v36  ;;  %v2966_v47 = vsel %vm522_vm1, %v553_v10, %v554_v41  ;;  %v564_v36 = vrot.slane %v2696_v62, 2  ;;  %v563_v41 = vrot.slane %v2702_v3, 2 }
  0x65   : > { %4488 = vst [vmem:[#allocation39_spill] sm:$0xff] %v2961_v50  ;;  %4489 = vst [vmem:[#allocation40_spill] sm:$0xff] %v2966_v47  ;;  %v2974_v52 = vsel %vm522_vm1, %v559_v4, %v561_v21  ;;  %v2979_v55 = vsel %vm522_vm1, %v558_v7, %v559_v4  ;;  %v569_v21 = vrot.slane %v2718_v16, 2  ;;  %v568_v4 = vrot.slane %v2724_v19, 2 }
  0x66   : > { %4490 = vst [vmem:[#allocation41_spill] sm:$0xff] %v2974_v52  ;;  %4491 = vst [vmem:[#allocation42_spill] sm:$0xff] %v2979_v55  ;;  %v2987_v10 = vsel %vm522_vm1, %v564_v36, %v566_v9  ;;  %v2992_v63 = vsel %vm522_vm1, %v563_v41, %v564_v36  ;;  %v574_v9 = vrot.slane %v2740_v34, 2  ;;  %v573_v36 = vrot.slane %v2746_v37, 2 }
  0x67   : > { %613 = vrot.lane.b32.xlu1 %v2909_v43, %s2448_s5  ;;  %4492 = vst [vmem:[#allocation43_spill] sm:$0xff] %v2987_v10  ;;  %4493 = vst [vmem:[#allocation44_spill] sm:$0xff] %v2992_v63 }
  0x68   : > { %611 = vrot.lane.b32.xlu0 %v2914_v14, %s2448_s5  ;;  %v3226_v14 = vld [vmem:[%s2537_s30 + $0x180] sm:$0xff] }
  0x69   : > { %4520 = vst [vmem:[#allocation71_spill] sm:$0xff] %v3226_v14 }
  0x6b   : > { %617 = vrot.lane.b32.xlu1 %v2922_v5, %s2448_s5 }
  0x6c   : > { %615 = vrot.lane.b32.xlu0 %v2927_v23, %s2448_s5 }
  0x6f   : > { %621 = vrot.lane.b32.xlu1 %v2935_v57, %s2448_s5 }
  0x70   : > { %619 = vrot.lane.b32.xlu0 %v2940_v31, %s2448_s5 }
  0x73   : > { %625 = vrot.lane.b32.xlu1 %v2948_v6, %s2448_s5 }
  0x74   : > { %623 = vrot.lane.b32.xlu0 %v2953_v39, %s2448_s5 }
  0x77   : > { %629 = vrot.lane.b32.xlu1 %v2961_v50, %s2448_s5  ;;  %v571_v50 = vrot.slane %v2721_v18, 2  ;;  %v3005_v18 = vsel %vm522_vm1, %v568_v4, %v569_v21 }
  0x78   : > { %627 = vrot.lane.b32.xlu0 %v2966_v47, %s2448_s5  ;;  %v596_v47 = vrot.slane %v2831_v45, 2  ;;  %v599_v45 = vrot.slane %v2850_v49, 2 }
  0x79   : > { %v3000_v7 = vsel %vm522_vm1, %v569_v21, %v571_v50  ;;  %v579_v50 = vrot.slane %v2762_v53, 2  ;;  %v578_v21 = vrot.slane %v2768_v59, 2 }
  0x7b   : > { %633 = vrot.lane.b32.xlu1 %v2974_v52, %s2448_s5  ;;  %v576_v52 = vrot.slane %v2743_v35, 2  ;;  %v3018_v35 = vsel %vm522_vm1, %v573_v36, %v574_v9 }
  0x7c   : > { %631 = vrot.lane.b32.xlu0 %v2979_v55, %s2448_s5  ;;  %4495 = vst [vmem:[#allocation46_spill] sm:$0xff] %v3018_v35  ;;  %v591_v55 = vrot.slane %v2809_v61, 2 }
  0x7d   : > { %v3013_v41 = vsel %vm522_vm1, %v574_v9, %v576_v52  ;;  %v584_v52 = vrot.slane %v2784_v26, 2  ;;  %v583_v9 = vrot.slane %v2790_v20, 2 }
  0x7e   : > { %4494 = vst [vmem:[#allocation45_spill] sm:$0xff] %v3013_v41 }
  0x7f   : > { %637 = vrot.lane.b32.xlu1 %v2987_v10, %s2448_s5  ;;  %v581_v10 = vrot.slane %v2765_v58, 2  ;;  %v3031_v58 = vsel %vm522_vm1, %v578_v21, %v579_v50 }
  0x80   : > { %635 = vrot.lane.b32.xlu0 %v2992_v63, %s2448_s5  ;;  %v586_v63 = vrot.slane %v2787_v29, 2  ;;  %4497 = vst [vmem:[#allocation48_spill] sm:$0xff] %v3031_v58  ;;  %v3044_v29 = vsel %vm522_vm1, %v583_v9, %v584_v52 }
  0x81   : > { %v3026_v4 = vsel %vm522_vm1, %v579_v50, %v581_v10  ;;  %v589_v10 = vrot.slane %v2806_v42, 2  ;;  %4499 = vst [vmem:[#allocation50_spill] sm:$0xff] %v3044_v29  ;;  %v588_v50 = vrot.slane %v2812_v13, 2 }
  0x82   : > { %4496 = vst [vmem:[#allocation47_spill] sm:$0xff] %v3026_v4  ;;  %v3039_v36 = vsel %vm522_vm1, %v584_v52, %v586_v63  ;;  %v594_v63 = vrot.slane %v2828_v60, 2  ;;  %v593_v52 = vrot.slane %v2834_v27, 2 }
  0x83   : > { %641 = vrot.lane.b32.xlu1 %v3000_v7, %s2448_s5  ;;  %4498 = vst [vmem:[#allocation49_spill] sm:$0xff] %v3039_v36  ;;  %v3052_v21 = vsel %vm522_vm1, %v589_v10, %v591_v55  ;;  %v3059_v61 = vsel %vm522_vm1, %v588_v50, %v589_v10  ;;  %v598_v50 = vrot.slane %v2856_v8, 2 }
  0x84   : > { %639 = vrot.lane.b32.xlu0 %v3005_v18, %s2448_s5  ;;  %4500 = vst [vmem:[#allocation51_spill] sm:$0xff] %v3052_v21  ;;  %4502 = vst [vmem:[#allocation53_spill] sm:$0xff] %v3059_v61  ;;  %v3069_v55 = vsel %vm522_vm1, %v594_v63, %v596_v47  ;;  %v3076_v10 = vsel %vm522_vm1, %v593_v52, %v594_v63 }
  0x85   : > { %4504 = vst [vmem:[#allocation55_spill] sm:$0xff] %v3069_v55  ;;  %4506 = vst [vmem:[#allocation57_spill] sm:$0xff] %v3076_v10 }
  0x87   : > { %645 = vrot.lane.b32.xlu1 %v3013_v41, %s2448_s5 }
  0x88   : > { %643 = vrot.lane.b32.xlu0 %v3018_v35, %s2448_s5 }
  0x8b   : > { %649 = vrot.lane.b32.xlu1 %v3026_v4, %s2448_s5 }
  0x8c   : > { %647 = vrot.lane.b32.xlu0 %v3031_v58, %s2448_s5 }
  0x8f   : > { %653 = vrot.lane.b32.xlu1 %v3039_v36, %s2448_s5 }
  0x90   : > { %651 = vrot.lane.b32.xlu0 %v3044_v29, %s2448_s5 }
  0x91   : > { %v3056_v6 = vpop.permute.xlu1 %430 }
  0x92   : > { %4501 = vst [vmem:[#allocation52_spill] sm:$0xff] %v3056_v6  ;;  %v3062_v9 = vpop.permute.xlu0 %426  ;;  %v601_v6 = vrot.slane %v2853_v44, 2  ;;  %v3091_v44 = vsel %vm522_vm1, %v598_v50, %v599_v45 }
  0x93   : > { %4503 = vst [vmem:[#allocation54_spill] sm:$0xff] %v3062_v9  ;;  %657 = vrot.lane.b32.xlu1 %v3052_v21, %s2448_s5  ;;  %4509 = vst [vmem:[#allocation60_spill] sm:$0xff] %v3091_v44 }
  0x94   : > { %655 = vrot.lane.b32.xlu0 %v3059_v61, %s2448_s5  ;;  %v3086_v47 = vsel %vm522_vm1, %v599_v45, %v601_v6 }
  0x95   : > { %v3073_v39 = vpop.permute.xlu1 %432  ;;  %4508 = vst [vmem:[#allocation59_spill] sm:$0xff] %v3086_v47 }
  0x96   : > { %4505 = vst [vmem:[#allocation56_spill] sm:$0xff] %v3073_v39  ;;  %v3079_v9 = vpop.permute.xlu0 %428 }
  0x97   : > { %4507 = vst [vmem:[#allocation58_spill] sm:$0xff] %v3079_v9  ;;  %661 = vrot.lane.b32.xlu1 %v3069_v55, %s2448_s5 }
  0x98   : > { %659 = vrot.lane.b32.xlu0 %v3076_v10, %s2448_s5 }
  0x99   : > { %v3088_v21 = vpop.permute.xlu1 %436 }
  0x9a   : > { %v3093_v63 = vpop.permute.xlu0 %434 }
  0x9b   : > { %665 = vrot.lane.b32.xlu1 %v3086_v47, %s2448_s5 }
  0x9c   : > { %663 = vrot.lane.b32.xlu0 %v3091_v44, %s2448_s5 }
  0x9d   : > { %v3099_v52 = vpop.permute.xlu1 %440 }
  0x9e   : > { %v3101_v55 = vpop.permute.xlu0 %438 }
  0x9f   : > { %703 = vrot.lane.b32.xlu1 %v2543_v1, %s2449_s6 }
  0xa0   : > { %701 = vrot.lane.b32.xlu0 %v2540_v0, %s2449_s6 }
  0xa1   : > { %v3107_v6 = vpop.permute.xlu1 %444 }
  0xa2   : > { %v3109_v45 = vpop.permute.xlu0 %442 }
  0xa3   : > { %707 = vrot.lane.b32.xlu1 %v2563_v11, %s2449_s6 }
  0xa4   : > { %705 = vrot.lane.b32.xlu0 %v2573_v15, %s2449_s6 }
  0xa5   : > { %v3115_v50 = vpop.permute.xlu1 %448 }
  0xa6   : > { %v3117_v47 = vpop.permute.xlu0 %446 }
  0xa7   : > { %711 = vrot.lane.b32.xlu1 %v2587_v22, %s2449_s6 }
  0xa8   : > { %709 = vrot.lane.b32.xlu0 %v2593_v24, %s2449_s6 }
  0xa9   : > { %v3123_v0 = vpop.permute.xlu1 %452 }
  0xaa   : > { %v3125_v1 = vpop.permute.xlu0 %450 }
  0xab   : > { %715 = vrot.lane.b32.xlu1 %v2608_v30, %s2449_s6 }
  0xac   : > { %713 = vrot.lane.b32.xlu0 %v2614_v32, %s2449_s6 }
  0xad   : > { %v3131_v44 = vpop.permute.xlu1 %456 }
  0xae   : > { %v3133_v39 = vpop.permute.xlu0 %454 }
  0xaf   : > { %719 = vrot.lane.b32.xlu1 %v2630_v38, %s2449_s6 }
  0xb0   : > { %717 = vrot.lane.b32.xlu0 %v2636_v40, %s2449_s6 }
  0xb1   : > { %v3139_v10 = vpop.permute.xlu1 %460 }
  0xb2   : > { %4510 = vst [vmem:[#allocation61_spill] sm:$0xff] %v3139_v10  ;;  %v3141_v9 = vpop.permute.xlu0 %458 }
  0xb3   : > { %4511 = vst [vmem:[#allocation62_spill] sm:$0xff] %v3141_v9  ;;  %723 = vrot.lane.b32.xlu1 %v2652_v46, %s2449_s6 }
  0xb4   : > { %721 = vrot.lane.b32.xlu0 %v2658_v48, %s2449_s6 }
  0xb5   : > { %v3147_v61 = vpop.permute.xlu1 %464 }
  0xb6   : > { %4512 = vst [vmem:[#allocation63_spill] sm:$0xff] %v3147_v61  ;;  %v3149_v36 = vpop.permute.xlu0 %462 }
  0xb7   : > { %4513 = vst [vmem:[#allocation64_spill] sm:$0xff] %v3149_v36  ;;  %727 = vrot.lane.b32.xlu1 %v2674_v54, %s2449_s6 }
  0xb8   : > { %725 = vrot.lane.b32.xlu0 %v2680_v56, %s2449_s6 }
  0xb9   : > { %v3155_v57 = vpop.permute.xlu1 %468 }
  0xba   : > { %v3157_v10 = vpop.permute.xlu0 %466 }
  0xbb   : > { %731 = vrot.lane.b32.xlu1 %v2696_v62, %s2449_s6 }
  0xbc   : > { %729 = vrot.lane.b32.xlu0 %v2702_v3, %s2449_s6 }
  0xbd   : > { %v3163_v9 = vpop.permute.xlu1 %472 }
  0xbe   : > { %v3165_v61 = vpop.permute.xlu0 %470 }
  0xbf   : > { %735 = vrot.lane.b32.xlu1 %v2718_v16, %s2449_s6 }
  0xc0   : > { %733 = vrot.lane.b32.xlu0 %v2724_v19, %s2449_s6 }
  0xc1   : > { %v3171_v36 = vpop.permute.xlu1 %476 }
  0xc2   : > { %v3173_v31 = vpop.permute.xlu0 %474 }
  0xc3   : > { %739 = vrot.lane.b32.xlu1 %v2740_v34, %s2449_s6 }
  0xc4   : > { %737 = vrot.lane.b32.xlu0 %v2746_v37, %s2449_s6 }
  0xc5   : > { %v3179_v62 = vpop.permute.xlu1 %480 }
  0xc6   : > { %v3181_v3 = vpop.permute.xlu0 %478 }
  0xc7   : > { %743 = vrot.lane.b32.xlu1 %v2762_v53, %s2449_s6 }
  0xc8   : > { %741 = vrot.lane.b32.xlu0 %v2768_v59, %s2449_s6 }
  0xc9   : > { %v3187_v16 = vpop.permute.xlu1 %484 }
  0xca   : > { %v3189_v19 = vpop.permute.xlu0 %482 }
  0xcb   : > { %747 = vrot.lane.b32.xlu1 %v2784_v26, %s2449_s6 }
  0xcc   : > { %745 = vrot.lane.b32.xlu0 %v2790_v20, %s2449_s6 }
  0xcd   : > { %v3195_v29 = vpop.permute.xlu1 %488 }
  0xce   : > { %v3197_v4 = vpop.permute.xlu0 %486 }
  0xcf   : > { %4514 = vst [vmem:[#allocation65_spill] sm:$0xff] %v3197_v4  ;;  %751 = vrot.lane.b32.xlu1 %v2806_v42, %s2449_s6 }
  0xd0   : > { %749 = vrot.lane.b32.xlu0 %v2812_v13, %s2449_s6 }
  0xd1   : > { %v3203_v5 = vpop.permute.xlu1 %605 }
  0xd2   : > { %4515 = vst [vmem:[#allocation66_spill] sm:$0xff] %v3203_v5  ;;  %v3205_v23 = vpop.permute.xlu0 %603  ;;  %v3220_v5 = vld [vmem:[%s2537_s30 + $0x188] sm:$0xff] }
  0xd3   : > { %4516 = vst [vmem:[#allocation67_spill] sm:$0xff] %v3205_v23  ;;  %755 = vrot.lane.b32.xlu1 %v2828_v60, %s2449_s6  ;;  %4519 = vst [vmem:[#allocation70_spill] sm:$0xff] %v3220_v5  ;;  %v1307_v23 = vsel %vm1301_vm2, %v2563_v11, %v3088_v21  ;;  %v1309_v21 = vsel %vm1301_vm2, %v2587_v22, %v3099_v52 }
  0xd4   : > { %753 = vrot.lane.b32.xlu0 %v2834_v27, %s2449_s6 }
  0xd5   : > { %v3211_v58 = vpop.permute.xlu1 %609 }
  0xd6   : > { %4517 = vst [vmem:[#allocation68_spill] sm:$0xff] %v3211_v58  ;;  %v3213_v41 = vpop.permute.xlu0 %607  ;;  %v1306_v58 = vsel %vm1301_vm2, %v2573_v15, %v3093_v63  ;;  %v1311_v63 = vsel %vm1301_vm2, %v2608_v30, %v3107_v6  ;;  %v1312_v30 = vsel %vm1301_vm2, %v2636_v40, %v3117_v47  ;;  %v1314_v40 = vsel %vm1301_vm2, %v2658_v48, %v3125_v1 }
  0xd7   : > { %4518 = vst [vmem:[#allocation69_spill] sm:$0xff] %v3213_v41  ;;  %759 = vrot.lane.b32.xlu1 %v2850_v49, %s2449_s6  ;;  %v1316_v48 = vsel %vm1301_vm2, %v2680_v56, %v3133_v39  ;;  %v4527_v56 = vld [vmem:[#allocation11_spill] sm:$0xff] }
  0xd8   : > { %757 = vrot.lane.b32.xlu0 %v2856_v8, %s2449_s6 }
  0xd9   : > { %v614_v43 = vpop.permute.xlu1 %613 }
  0xda   : > { %v3232_v41 = vsel %vm1334_vm3, %v1307_v23, %v614_v43  ;;  %v612_v35 = vpop.permute.xlu0 %611  ;;  %v1308_v43 = vsel %vm1301_vm2, %v2593_v24, %v3101_v55 }
  0xdb   : > { %v3235_v8 = vsel %vm1334_vm3, %v1306_v58, %v612_v35  ;;  %763 = vrot.lane.b32.xlu1 %v3220_v5, %s2449_s6 }
  0xdc   : > { %761 = vrot.lane.b32.xlu0 %v3226_v14, %s2449_s6  ;;  %s2454_s6 = smov 32  }
  0xdd   : > { %v618_v4 = vpop.permute.xlu1 %617 }
  0xde   : > { %v3248_v23 = vsel %vm1334_vm3, %v1309_v21, %v618_v4  ;;  %v616_v35 = vpop.permute.xlu0 %615  ;;  %v1310_v4 = vsel %vm1301_vm2, %v2614_v32, %v3109_v45 }
  0xdf   : > { %v3251_v58 = vsel %vm1334_vm3, %v1308_v43, %v616_v35  ;;  %805 = vrot.lane.b32.xlu1 %v2580_v17, %s2450_s7  ;;  %v4521_v35 = vld [vmem:[#allocation5_spill] sm:$0xff] }
  0xe0   : > { %803 = vrot.lane.b32.xlu0 %v2566_v12, %s2450_s7  ;;  %v1313_v12 = vsel %vm1301_vm2, %v2630_v38, %v3115_v50  ;;  %v1315_v38 = vsel %vm1301_vm2, %v2652_v46, %v3123_v0  ;;  %v1317_v46 = vsel %vm1301_vm2, %v2674_v54, %v3131_v44  ;;  %v4526_v44 = vld [vmem:[#allocation10_spill] sm:$0xff] }
  0xe1   : > { %v622_v52 = vpop.permute.xlu1 %621 }
  0xe2   : > { %v3264_v55 = vsel %vm1334_vm3, %v1311_v63, %v622_v52  ;;  %v620_v21 = vpop.permute.xlu0 %619 }
  0xe3   : > { %v3267_v43 = vsel %vm1334_vm3, %v1310_v4, %v620_v21  ;;  %809 = vrot.lane.b32.xlu1 %v2599_v25, %s2450_s7  ;;  %v4522_v4 = vld [vmem:[#allocation6_spill] sm:$0xff]  ;;  %v4523_v21 = vld [vmem:[#allocation7_spill] sm:$0xff] }
  0xe4   : > { %807 = vrot.lane.b32.xlu0 %v2604_v28, %s2450_s7 }
  0xe5   : > { %v626_v17 = vpop.permute.xlu1 %625 }
  0xe6   : > { %v3280_v32 = vsel %vm1334_vm3, %v1313_v12, %v626_v17  ;;  %v624_v6 = vpop.permute.xlu0 %623 }
  0xe7   : > { %v3283_v45 = vsel %vm1334_vm3, %v1312_v30, %v624_v6  ;;  %813 = vrot.lane.b32.xlu1 %v2621_v33, %s2450_s7  ;;  %v4524_v30 = vld [vmem:[#allocation8_spill] sm:$0xff]  ;;  %v4525_v6 = vld [vmem:[#allocation9_spill] sm:$0xff] }
  0xe8   : > { %811 = vrot.lane.b32.xlu0 %v4521_v35, %s2450_s7 }
  0xe9   : > { %v630_v50 = vpop.permute.xlu1 %629 }
  0xea   : > { %v3296_v47 = vsel %vm1334_vm3, %v1315_v38, %v630_v50  ;;  %v628_v63 = vpop.permute.xlu0 %627 }
  0xeb   : > { %v3299_v52 = vsel %vm1334_vm3, %v1314_v40, %v628_v63  ;;  %817 = vrot.lane.b32.xlu1 %v4522_v4, %s2450_s7  ;;  %v4528_v40 = vld [vmem:[#allocation17_spill] sm:$0xff] }
  0xec   : > { %815 = vrot.lane.b32.xlu0 %v4523_v21, %s2450_s7  ;;  %v4529_v63 = vld [vmem:[#allocation13_spill] sm:$0xff] }
  0xed   : > { %v634_v0 = vpop.permute.xlu1 %633 }
  0xee   : > { %v3312_v1 = vsel %vm1334_vm3, %v1317_v46, %v634_v0  ;;  %v632_v12 = vpop.permute.xlu0 %631  ;;  %v1323_v46 = vsel %vm1301_vm2, %v2740_v34, %v3155_v57  ;;  %v1325_v57 = vsel %vm1301_vm2, %v2762_v53, %v3163_v9 }
  0xef   : > { %v3315_v17 = vsel %vm1334_vm3, %v1316_v48, %v632_v12  ;;  %821 = vrot.lane.b32.xlu1 %v4524_v30, %s2450_s7  ;;  %v1322_v48 = vsel %vm1301_vm2, %v2746_v37, %v3157_v10  ;;  %v1324_v10 = vsel %vm1301_vm2, %v2768_v59, %v3165_v61  ;;  %v1326_v61 = vsel %vm1301_vm2, %v2790_v20, %v3173_v31 }
  0xf0   : > { %819 = vrot.lane.b32.xlu0 %v4525_v6, %s2450_s7  ;;  %v1328_v31 = vsel %vm1301_vm2, %v2812_v13, %v3181_v3 }
  0xf1   : > { %v3321_v38 = vpop.permute.xlu1 %637 }
  0xf2   : > { %v3323_v54 = vpop.permute.xlu0 %635 }
  0xf3   : > { %825 = vrot.lane.b32.xlu1 %v4526_v44, %s2450_s7 }
  0xf4   : > { %823 = vrot.lane.b32.xlu0 %v4527_v56, %s2450_s7 }
  0xf5   : > { %v3329_v39 = vpop.permute.xlu1 %641 }
  0xf6   : > { %v3331_v50 = vpop.permute.xlu0 %639 }
  0xf7   : > { %835 = vrot.lane.b32.xlu1 %v4528_v40, %s2450_s7  ;;  %v4530_v40 = vld [vmem:[#allocation16_spill] sm:$0xff] }
  0xf8   : > { %827 = vrot.lane.b32.xlu0 %v4529_v63, %s2450_s7 }
  0xf9   : > { %v646_v0 = vpop.permute.xlu1 %645 }
  0xfa   : > { %v3344_v12 = vsel %vm1334_vm3, %v1323_v46, %v646_v0  ;;  %v644_v5 = vpop.permute.xlu0 %643 }
  0xfb   : > { %v3347_v14 = vsel %vm1334_vm3, %v1322_v48, %v644_v5  ;;  %904 = vrot.lane.b32.xlu1 %v2901_v51, %s2451_s8  ;;  %v1327_v51 = vsel %vm1301_vm2, %v2784_v26, %v3171_v36 }
  0xfc   : > { %837 = vrot.lane.b32.xlu0 %v4530_v40, %s2450_s7 }
  0xfd   : > { %v650_v63 = vpop.permute.xlu1 %649 }
  0xfe   : > { %v3360_v46 = vsel %vm1334_vm3, %v1325_v57, %v650_v63  ;;  %v648_v5 = vpop.permute.xlu0 %647 }
  0xff   : > { %v3363_v0 = vsel %vm1334_vm3, %v1324_v10, %v648_v5  ;;  %906 = vrot.lane.b32.xlu1 %v2896_v2, %s2451_s8  ;;  %v1329_v2 = vsel %vm1301_vm2, %v2806_v42, %v3179_v62  ;;  %v1331_v62 = vsel %vm1301_vm2, %v2828_v60, %v3187_v16  ;;  %v1567_v60 = vld [vmem:[%s4342_s1 + $0x10] sm:$0xff] }
 0x100   : > { %936 = vrot.lane.b32.xlu0 %v3005_v18, %s2451_s8 }
 0x101   : > { %v654_v9 = vpop.permute.xlu1 %653 }
 0x102   : > { %v3376_v63 = vsel %vm1334_vm3, %v1327_v51, %v654_v9  ;;  %v652_v48 = vpop.permute.xlu0 %651  ;;  %v1330_v9 = vsel %vm1301_vm2, %v2834_v27, %v3189_v19  ;;  %v1333_v27 = vsel %vm1301_vm2, %v2850_v49, %v3195_v29  ;;  %v4531_v19 = vld [vmem:[#allocation65_spill] sm:$0xff]  ;;  %v1566_v49 = vld [vmem:[%s4342_s1 + $0x8] sm:$0xff] }
 0x103   : > { %v3379_v57 = vsel %vm1334_vm3, %v1326_v61, %v652_v48  ;;  %1002 = vrot.lane.b32.xlu1 %v2573_v15, %s2452_s9  ;;  %v1569_v15 = vld [vmem:[%s4342_s1 + $0x20] sm:$0xf]  ;;  %v1568_v61 = vld [vmem:[%s4342_s1 + $0x18] sm:$0xff] }
 0x104   : > { %938 = vrot.lane.b32.xlu0 %v3000_v7, %s2451_s8  ;;  %2216 = vmatprep.subr.msk.mxu0 %vm1674_vm4, %v1569_v15  ;;  %v1565_v29 = vld [vmem:[%s4342_s1] sm:$0xff] }
 0x105   : > { %v658_v36 = vpop.permute.xlu1 %657  ;;  %2274 = vmatprep.subr.msk.mxu1 %vm1674_vm4, %v1569_v15  ;;  %2217 = vmatpush3.msk.msra.mxu0 %vm1674_vm4, %v1569_v15 }
 0x106   : > { %v3392_v10 = vsel %vm1334_vm3, %v1329_v2, %v658_v36  ;;  %v656_v5 = vpop.permute.xlu0 %655  ;;  %2279 = vmatpush3.msk.msra.mxu1 %vm1674_vm4, %v1569_v15  ;;  %2218 = vmatprep.subr.mxu0 %v1568_v61  ;;  %v4532_v2 = vld [vmem:[#allocation26_spill] sm:$0xff] }
 0x107   : > { %v3395_v51 = vsel %vm1334_vm3, %v1328_v31, %v656_v5  ;;  %1004 = vrot.lane.b32.xlu1 %v2563_v11, %s2452_s9  ;;  %2219 = vmatpush3.msra.mxu0 %v1568_v61  ;;  %v4533_v5 = vld [vmem:[#allocation19_spill] sm:$0xff] }
 0x108   : > { %1034 = vrot.lane.b32.xlu0 %v2746_v37, %s2452_s9  ;;  %2220 = vmatprep.subr.mxu0 %v1567_v60 }
 0x109   : > { %v662_v3 = vpop.permute.xlu1 %661  ;;  %2275 = vmatprep.subr.mxu1 %v1568_v61  ;;  %2221 = vmatpush3.msra.mxu0 %v1567_v60 }
 0x10a   : > { %v3411_v11 = vsel %vm1334_vm3, %v1331_v62, %v662_v3  ;;  %v660_v37 = vpop.permute.xlu0 %659  ;;  %2280 = vmatpush3.msra.mxu1 %v1568_v61  ;;  %2222 = vmatprep.subr.mxu0 %v1566_v49  ;;  %v4534_v3 = vld [vmem:[#allocation18_spill] sm:$0xff] }
 0x10b   : > { %v3417_v48 = vsel %vm1334_vm3, %v1330_v9, %v660_v37  ;;  %1104 = vrot.lane.b32.xlu1 %v2604_v28, %s2453_s21  ;;  %v1332_v28 = vsel %vm1301_vm2, %v4532_v2, %v4531_v19  ;;  %2276 = vmatprep.subr.mxu1 %v1567_v60  ;;  %v4535_v61 = vld [vmem:[#allocation46_spill] sm:$0xff] }
 0x10c   : > { %1036 = vrot.lane.b32.xlu0 %v2740_v34, %s2452_s9  ;;  %2223 = vmatpush3.msra.mxu0 %v1566_v49 }
 0x10d   : > { %v666_v16 = vpop.permute.xlu1 %665  ;;  %2281 = vmatpush3.msra.mxu1 %v1567_v60  ;;  %2224 = vmatprep.subr.mxu0 %v1565_v29  ;;  %v4536_v60 = vld [vmem:[#allocation32_spill] sm:$0xff] }
 0x10e   : > { %v3433_v36 = vsel %vm1334_vm3, %v1333_v27, %v666_v16  ;;  %v664_v34 = vpop.permute.xlu0 %663  ;;  %2277 = vmatprep.subr.mxu1 %v1566_v49  ;;  %2225 = vmatpush3.msra.mxu0 %v1565_v29 }
 0x10f   : > { %v3436_v31 = vsel %vm1334_vm3, %v1332_v28, %v664_v34  ;;  %839 = vrot.lane.b32.xlu1 %v4533_v5, %s2450_s7  ;;  %2282 = vmatpush3.msra.mxu1 %v1566_v49 }
 0x110   : > { %1136 = vrot.lane.b32.xlu0 %v4533_v5, %s2453_s21  ;;  %2278 = vmatprep.subr.mxu1 %v1565_v29  ;;  %v4537_v5 = vld [vmem:[#allocation31_spill] sm:$0xff] }
 0x111   : > { %v3448_v15 = vpop.permute.xlu1 %703  ;;  %2283 = vmatpush3.msra.mxu1 %v1565_v29 }
 0x112   : > { %v3450_v62 = vpop.permute.xlu0 %701 }
 0x113   : > { %1138 = vrot.lane.b32.xlu1 %v4534_v3, %s2453_s21 }
 0x114   : > { %1106 = vrot.lane.b32.xlu0 %v2599_v25, %s2453_s21 }
 0x115   : > { %v3456_v9 = vpop.permute.xlu1 %707 }
 0x116   : > { %v3458_v37 = vpop.permute.xlu0 %705 }
 0x117   : > { %1237 = vrot.lane.b32.xlu1 %v4535_v61, %s2454_s6 }
 0x118   : > { %1205 = vrot.lane.b32.xlu0 %v4536_v60, %s2454_s6 }
 0x119   : > { %v712_v27 = vpop.permute.xlu1 %711 }
 0x11a   : > { %v3466_v16 = vsel %vm1367_vm5, %v3232_v41, %v712_v27  ;;  %v710_v25 = vpop.permute.xlu0 %709 }
 0x11b   : > { %v3470_v19 = vsel %vm1367_vm5, %v3235_v8, %v710_v25  ;;  %908 = vrot.lane.b32.xlu1 %v4536_v60, %s2451_s8 }
 0x11c   : > { %841 = vrot.lane.b32.xlu0 %v4534_v3, %s2450_s7 }
 0x11d   : > { %v716_v2 = vpop.permute.xlu1 %715 }
 0x11e   : > { %v3478_v28 = vsel %vm1367_vm5, %v3248_v23, %v716_v2  ;;  %v714_v34 = vpop.permute.xlu0 %713 }
 0x11f   : > { %v3482_v41 = vsel %vm1367_vm5, %v3251_v58, %v714_v34  ;;  %1207 = vrot.lane.b32.xlu1 %v4537_v5, %s2454_s6  ;;  %v4539_v58 = vld [vmem:[#allocation45_spill] sm:$0xff]  ;;  %v4547_v34 = vld [vmem:[#allocation20_spill] sm:$0xff] }
 0x120   : > { %940 = vrot.lane.b32.xlu0 %v4535_v61, %s2451_s8 }
 0x121   : > { %v720_v8 = vpop.permute.xlu1 %719 }
 0x122   : > { %v3490_v49 = vsel %vm1367_vm5, %v3264_v55, %v720_v8  ;;  %v718_v29 = vpop.permute.xlu0 %717 }
 0x123   : > { %4538 = vst [vmem:[#allocation5_spill] sm:$0xff] %v3490_v49  ;;  %v3494_v23 = vsel %vm1367_vm5, %v3267_v43, %v718_v29  ;;  %910 = vrot.lane.b32.xlu1 %v4537_v5, %s2451_s8  ;;  %v4548_v29 = vld [vmem:[#allocation48_spill] sm:$0xff] }
 0x124   : > { %1239 = vrot.lane.b32.xlu0 %v4539_v58, %s2454_s6 }
 0x125   : > { %v724_v3 = vpop.permute.xlu1 %723 }
 0x126   : > { %v3502_v61 = vsel %vm1367_vm5, %v3280_v32, %v724_v3  ;;  %v722_v60 = vpop.permute.xlu0 %721 }
 0x127   : > { %4540 = vst [vmem:[#allocation6_spill] sm:$0xff] %v3502_v61  ;;  %v3506_v55 = vsel %vm1367_vm5, %v3283_v45, %v722_v60  ;;  %1006 = vrot.lane.b32.xlu1 %v2593_v24, %s2452_s9  ;;  %v2354_v61 = vld [vmem:[%s2537_s30] sm:$0xff] }
 0x128   : > { %4541 = vst [vmem:[#allocation7_spill] sm:$0xff] %v3506_v55  ;;  %942 = vrot.lane.b32.xlu0 %v4539_v58, %s2451_s8  ;;  %v4549_v58 = vld [vmem:[#allocation34_spill] sm:$0xff] }
 0x129   : > { %v728_v43 = vpop.permute.xlu1 %727 }
 0x12a   : > { %v3514_v27 = vsel %vm1367_vm5, %v3296_v47, %v728_v43  ;;  %v726_v25 = vpop.permute.xlu0 %725 }
 0x12b   : > { %4542 = vst [vmem:[#allocation8_spill] sm:$0xff] %v3514_v27  ;;  %v3518_v32 = vsel %vm1367_vm5, %v3299_v52, %v726_v25  ;;  %1008 = vrot.lane.b32.xlu1 %v2587_v22, %s2452_s9  ;;  %v4568_v27 = vld [vmem:[#allocation25_spill] sm:$0xff] }
 0x12c   : > { %4543 = vst [vmem:[#allocation9_spill] sm:$0xff] %v3518_v32  ;;  %1038 = vrot.lane.b32.xlu0 %v2768_v59, %s2452_s9  ;;  %v4546_v59 = vld [vmem:[#allocation21_spill] sm:$0xff] }
 0x12d   : > { %v732_v24 = vpop.permute.xlu1 %731  ;;  %v3709_v32 = vld [vmem:[%s2537_s30 + $0xc0] sm:$0xff] }
 0x12e   : > { %v3526_v45 = vsel %vm1367_vm5, %v3312_v1, %v732_v24  ;;  %v730_v2 = vpop.permute.xlu0 %729 }
 0x12f   : > { %4544 = vst [vmem:[#allocation10_spill] sm:$0xff] %v3526_v45  ;;  %v3530_v47 = vsel %vm1367_vm5, %v3315_v17, %v730_v2  ;;  %1108 = vrot.lane.b32.xlu1 %v4521_v35, %s2453_s21  ;;  %v2351_v45 = vld [vmem:[%s2537_s30 + $0x78] sm:$0xff] }
 0x130   : > { %4545 = vst [vmem:[#allocation11_spill] sm:$0xff] %v3530_v47  ;;  %1040 = vrot.lane.b32.xlu0 %v2762_v53, %s2452_s9  ;;  %v2352_v47 = vld [vmem:[%s2537_s30 + $0x80] sm:$0xff] }
 0x131   : > { %v3536_v22 = vpop.permute.xlu1 %735 }
 0x132   : > { %v3538_v52 = vpop.permute.xlu0 %733 }
 0x133   : > { %843 = vrot.lane.b32.xlu1 %v4546_v59, %s2450_s7 }
 0x134   : > { %1140 = vrot.lane.b32.xlu0 %v4546_v59, %s2453_s21 }
 0x135   : > { %v3544_v1 = vpop.permute.xlu1 %739 }
 0x136   : > { %v3546_v17 = vpop.permute.xlu0 %737 }
 0x137   : > { %1142 = vrot.lane.b32.xlu1 %v4547_v34, %s2453_s21 }
 0x138   : > { %1110 = vrot.lane.b32.xlu0 %v2621_v33, %s2453_s21 }
 0x139   : > { %v744_v53 = vpop.permute.xlu1 %743 }
 0x13a   : > { %v3554_v35 = vsel %vm1367_vm5, %v3344_v12, %v744_v53  ;;  %v742_v5 = vpop.permute.xlu0 %741 }
 0x13b   : > { %v3558_v8 = vsel %vm1367_vm5, %v3347_v14, %v742_v5  ;;  %1241 = vrot.lane.b32.xlu1 %v4548_v29, %s2454_s6 }
 0x13c   : > { %1209 = vrot.lane.b32.xlu0 %v4549_v58, %s2454_s6 }
 0x13d   : > { %v748_v3 = vpop.permute.xlu1 %747 }
 0x13e   : > { %v3566_v33 = vsel %vm1367_vm5, %v3360_v46, %v748_v3  ;;  %v746_v60 = vpop.permute.xlu0 %745 }
 0x13f   : > { %v3570_v12 = vsel %vm1367_vm5, %v3363_v0, %v746_v60  ;;  %912 = vrot.lane.b32.xlu1 %v4549_v58, %s2451_s8  ;;  %v4551_v0 = vld [vmem:[#allocation33_spill] sm:$0xff]  ;;  %v2350_v60 = vld [vmem:[%s2537_s30 + $0x68] sm:$0xff] }
 0x140   : > { %845 = vrot.lane.b32.xlu0 %v4547_v34, %s2450_s7 }
 0x141   : > { %v752_v14 = vpop.permute.xlu1 %751 }
 0x142   : > { %v3578_v43 = vsel %vm1367_vm5, %v3376_v63, %v752_v14  ;;  %v750_v25 = vpop.permute.xlu0 %749 }
 0x143   : > { %4550 = vst [vmem:[#allocation16_spill] sm:$0xff] %v3578_v43  ;;  %v3582_v46 = vsel %vm1367_vm5, %v3379_v57, %v750_v25  ;;  %1211 = vrot.lane.b32.xlu1 %v4551_v0, %s2454_s6  ;;  %v4554_v57 = vld [vmem:[#allocation47_spill] sm:$0xff] }
 0x144   : > { %944 = vrot.lane.b32.xlu0 %v4548_v29, %s2451_s8  ;;  %v2349_v29 = vld [vmem:[%s2537_s30 + $0x60] sm:$0xff]  ;;  %v4559_v25 = vld [vmem:[#allocation23_spill] sm:$0xff] }
 0x145   : > { %v756_v24 = vpop.permute.xlu1 %755 }
 0x146   : > { %v3590_v2 = vsel %vm1367_vm5, %v3392_v10, %v756_v24  ;;  %v754_v59 = vpop.permute.xlu0 %753  ;;  %v4560_v24 = vld [vmem:[#allocation22_spill] sm:$0xff] }
 0x147   : > { %4552 = vst [vmem:[#allocation65_spill] sm:$0xff] %v3590_v2  ;;  %v3594_v63 = vsel %vm1367_vm5, %v3395_v51, %v754_v59  ;;  %914 = vrot.lane.b32.xlu1 %v4551_v0, %s2451_s8  ;;  %v4561_v59 = vld [vmem:[#allocation50_spill] sm:$0xff] }
 0x148   : > { %4553 = vst [vmem:[#allocation26_spill] sm:$0xff] %v3594_v63  ;;  %1243 = vrot.lane.b32.xlu0 %v4554_v57, %s2454_s6 }
 0x149   : > { %v760_v34 = vpop.permute.xlu1 %759 }
 0x14a   : > { %v3602_v53 = vsel %vm1367_vm5, %v3411_v11, %v760_v34  ;;  %v758_v5 = vpop.permute.xlu0 %757 }
 0x14b   : > { %4555 = vst [vmem:[#allocation19_spill] sm:$0xff] %v3602_v53  ;;  %v3606_v10 = vsel %vm1367_vm5, %v3417_v48, %v758_v5  ;;  %1010 = vrot.lane.b32.xlu1 %v2349_v29, %s2452_s9  ;;  %v4569_v53 = vld [vmem:[#allocation24_spill] sm:$0xff] }
 0x14c   : > { %4556 = vst [vmem:[#allocation18_spill] sm:$0xff] %v3606_v10  ;;  %946 = vrot.lane.b32.xlu0 %v4554_v57, %s2451_s8  ;;  %v4562_v57 = vld [vmem:[#allocation36_spill] sm:$0xff] }
 0x14d   : > { %v764_v51 = vpop.permute.xlu1 %763 }
 0x14e   : > { %v3614_v58 = vsel %vm1367_vm5, %v3433_v36, %v764_v51  ;;  %v762_v3 = vpop.permute.xlu0 %761  ;;  %v4565_v51 = vld [vmem:[#allocation35_spill] sm:$0xff] }
 0x14f   : > { %4557 = vst [vmem:[#allocation46_spill] sm:$0xff] %v3614_v58  ;;  %v3618_v11 = vsel %vm1367_vm5, %v3436_v31, %v762_v3  ;;  %1012 = vrot.lane.b32.xlu1 %v2350_v60, %s2452_s9 }
 0x150   : > { %4558 = vst [vmem:[#allocation32_spill] sm:$0xff] %v3618_v11  ;;  %1042 = vrot.lane.b32.xlu0 %v2790_v20, %s2452_s9 }
 0x151   : > { %v3624_v48 = vpop.permute.xlu1 %805 }
 0x152   : > { %v3626_v14 = vpop.permute.xlu0 %803 }
 0x153   : > { %1112 = vrot.lane.b32.xlu1 %v4523_v21, %s2453_s21 }
 0x154   : > { %1044 = vrot.lane.b32.xlu0 %v2784_v26, %s2452_s9 }
 0x155   : > { %v3632_v36 = vpop.permute.xlu1 %809 }
 0x156   : > { %v3634_v31 = vpop.permute.xlu0 %807 }
 0x157   : > { %847 = vrot.lane.b32.xlu1 %v4559_v25, %s2450_s7 }
 0x158   : > { %1144 = vrot.lane.b32.xlu0 %v4559_v25, %s2453_s21  ;;  %v4567_v25 = vld [vmem:[#allocation49_spill] sm:$0xff] }
 0x159   : > { %v3640_v20 = vpop.permute.xlu1 %813 }
 0x15a   : > { %v3642_v0 = vpop.permute.xlu0 %811 }
 0x15b   : > { %1146 = vrot.lane.b32.xlu1 %v4560_v24, %s2453_s21 }
 0x15c   : > { %1114 = vrot.lane.b32.xlu0 %v4522_v4, %s2453_s21 }
 0x15d   : > { %v3648_v26 = vpop.permute.xlu1 %817 }
 0x15e   : > { %v3650_v21 = vpop.permute.xlu0 %815 }
 0x15f   : > { %1245 = vrot.lane.b32.xlu1 %v4561_v59, %s2454_s6 }
 0x160   : > { %1213 = vrot.lane.b32.xlu0 %v4562_v57, %s2454_s6 }
 0x161   : > { %v3656_v34 = vpop.permute.xlu1 %821 }
 0x162   : > { %v3658_v5 = vpop.permute.xlu0 %819 }
 0x163   : > { %916 = vrot.lane.b32.xlu1 %v4562_v57, %s2451_s8 }
 0x164   : > { %849 = vrot.lane.b32.xlu0 %v4560_v24, %s2450_s7 }
 0x165   : > { %v3664_v4 = vpop.permute.xlu1 %825 }
 0x166   : > { %4563 = vst [vmem:[#allocation31_spill] sm:$0xff] %v3664_v4  ;;  %v3666_v29 = vpop.permute.xlu0 %823  ;;  %v4572_v4 = vld [vmem:[#allocation54_spill] sm:$0xff] }
 0x167   : > { %4564 = vst [vmem:[#allocation45_spill] sm:$0xff] %v3666_v29  ;;  %1215 = vrot.lane.b32.xlu1 %v4565_v51, %s2454_s6  ;;  %v1302_v2 = vsel %vm1301_vm2, %v2354_v61, %v4572_v4  ;;  %v4574_v29 = vld [vmem:[#allocation67_spill] sm:$0xff] }
 0x168   : > { %948 = vrot.lane.b32.xlu0 %v4561_v59, %s2451_s8  ;;  %v1335_v63 = vsel %vm1334_vm3, %v1302_v2, %v4574_v29 }
 0x169   : > { %v836_v3 = vpop.permute.xlu1 %835  ;;  %v1368_v49 = vsel %vm1367_vm5, %v1335_v63, %v3450_v62 }
 0x16a   : > { %v3672_v60 = vpop.permute.xlu0 %827 }
 0x16b   : > { %4566 = vst [vmem:[#allocation21_spill] sm:$0xff] %v3672_v60  ;;  %918 = vrot.lane.b32.xlu1 %v4565_v51, %s2451_s8  ;;  %v4570_v60 = vld [vmem:[#allocation62_spill] sm:$0xff] }
 0x16c   : > { %1247 = vrot.lane.b32.xlu0 %v4567_v25, %s2454_s6  ;;  %v1318_v10 = vsel %vm1301_vm2, %v3709_v32, %v4570_v60 }
 0x16d   : > { %v905_v24 = vpop.permute.xlu1 %904  ;;  %v1351_v55 = vsel %vm1334_vm3, %v1318_v10, %v3323_v54  ;;  %v1401_v54 = vsel %vm1400_vm6, %v1368_v49, %v3626_v14 }
 0x16e   : > { %v3678_v57 = vpop.permute.xlu0 %837  ;;  %v1384_v60 = vsel %vm1367_vm5, %v1351_v55, %v3538_v52  ;;  %v1434_v55 = vsel %vm1433_vm7, %v1401_v54, %v905_v24 }
 0x16f   : > { %1014 = vrot.lane.b32.xlu1 %v2351_v45, %s2452_s9  ;;  %v1417_v61 = vsel %vm1400_vm6, %v1384_v60, %v836_v3  ;;  %v2355_v3 = vld [vmem:[%s2537_s30 + $0x8] sm:$0xff] }
 0x170   : > { %950 = vrot.lane.b32.xlu0 %v4567_v25, %s2451_s8 }
 0x171   : > { %v3684_v58 = vpop.permute.xlu1 %906 }
 0x172   : > { %v937_v59 = vpop.permute.xlu0 %936 }
 0x173   : > { %1016 = vrot.lane.b32.xlu1 %v2352_v47, %s2452_s9  ;;  %v1450_v10 = vsel %vm1433_vm7, %v1417_v61, %v937_v59  ;;  %v4575_v59 = vld [vmem:[#allocation58_spill] sm:$0xff] }
 0x174   : > { %1046 = vrot.lane.b32.xlu0 %v2812_v13, %s2452_s9  ;;  %v1303_v24 = vsel %vm1301_vm2, %v2355_v3, %v4575_v59  ;;  %v2358_v59 = vld [vmem:[%s2537_s30 + $0x98] sm:$0xff] }
 0x175   : > { %v1003_v51 = vpop.permute.xlu1 %1002 }
 0x176   : > { %v3690_v11 = vpop.permute.xlu0 %938  ;;  %v1467_v62 = vsel %vm1466_vm8, %v1434_v55, %v1003_v51  ;;  %v4577_v51 = vld [vmem:[#allocation66_spill] sm:$0xff] }
 0x177   : > { %1116 = vrot.lane.b32.xlu1 %v4525_v6, %s2453_s21 }
 0x178   : > { %1048 = vrot.lane.b32.xlu0 %v2806_v42, %s2452_s9 }
 0x179   : > { %v1005_v45 = vpop.permute.xlu1 %1004 }
 0x17a   : > { %v1035_v25 = vpop.permute.xlu0 %1034 }
 0x17b   : > { %851 = vrot.lane.b32.xlu1 %v4568_v27, %s2450_s7  ;;  %v1483_v52 = vsel %vm1466_vm8, %v1450_v10, %v1035_v25  ;;  %v4576_v25 = vld [vmem:[#allocation37_spill] sm:$0xff] }
 0x17c   : > { %1148 = vrot.lane.b32.xlu0 %v4568_v27, %s2453_s21  ;;  %v4571_v27 = vld [vmem:[#allocation53_spill] sm:$0xff] }
 0x17d   : > { %v1105_v47 = vpop.permute.xlu1 %1104  ;;  %v4578_v10 = vld [vmem:[#allocation61_spill] sm:$0xff] }
 0x17e   : > { %v3700_v13 = vpop.permute.xlu0 %1036  ;;  %v1500_v63 = vsel %vm1499_vm9, %v1467_v62, %v1105_v47 }
 0x17f   : > { %1150 = vrot.lane.b32.xlu1 %v4569_v53, %s2453_s21 }
 0x180   : > { %1118 = vrot.lane.b32.xlu0 %v4524_v30, %s2453_s21  ;;  %v4573_v30 = vld [vmem:[#allocation38_spill] sm:$0xff] }
 0x181   : > { %v3706_v6 = vpop.permute.xlu1 %839 }
 0x182   : > { %v1137_v42 = vpop.permute.xlu0 %1136 }
 0x183   : > { %1249 = vrot.lane.b32.xlu1 %v4571_v27, %s2454_s6  ;;  %v1516_v2 = vsel %vm1499_vm9, %v1483_v52, %v1137_v42  ;;  %v1336_v42 = vsel %vm1334_vm3, %v1303_v24, %v4577_v51  ;;  %v4579_v52 = vld [vmem:[#allocation51_spill] sm:$0xff]  ;;  %v4580_v51 = vld [vmem:[#allocation28_spill] sm:$0xff] }
 0x184   : > { %1217 = vrot.lane.b32.xlu0 %v4573_v30, %s2454_s6  ;;  %v1369_v47 = vsel %vm1367_vm5, %v1336_v42, %v3448_v15  ;;  %v2359_v24 = vld [vmem:[%s2537_s30 + $0x150] sm:$0xff] }
 0x185   : > { %v1139_v43 = vpop.permute.xlu1 %1138  ;;  %v1402_v60 = vsel %vm1400_vm6, %v1369_v47, %v3624_v48 }
 0x186   : > { %v1107_v4 = vpop.permute.xlu0 %1106  ;;  %v1435_v54 = vsel %vm1433_vm7, %v1402_v60, %v3684_v58  ;;  %v4581_v60 = vld [vmem:[#allocation27_spill] sm:$0xff] }
 0x187   : > { %920 = vrot.lane.b32.xlu1 %v4573_v30, %s2451_s8  ;;  %v1468_v55 = vsel %vm1466_vm8, %v1435_v54, %v1005_v45 }
 0x188   : > { %853 = vrot.lane.b32.xlu0 %v4569_v53, %s2450_s7  ;;  %v1501_v62 = vsel %vm1499_vm9, %v1468_v55, %v1107_v4 }
 0x189   : > { %v1238_v49 = vpop.permute.xlu1 %1237 }
 0x18a   : > { %v1206_v14 = vpop.permute.xlu0 %1205  ;;  %v1549_v29 = vsel %vm1532_vm10, %v1516_v2, %v1238_v49 }
 0x18b   : > { %1219 = vrot.lane.b32.xlu1 %v4576_v25, %s2454_s6  ;;  %v1533_v53 = vsel %vm1532_vm10, %v1500_v63, %v1206_v14  ;;  %2250 = vmatprep.mubr.msk.f32.mxu1 %vm1577_vm11, %v1549_v29  ;;  %v2357_v14 = vld [vmem:[%s2537_s30 + $0x90] sm:$0xff] }
 0x18c   : > { %952 = vrot.lane.b32.xlu0 %v4571_v27, %s2451_s8  ;;  %2226 = vmatprep.mubr.msk.f32.mxu0 %vm1577_vm11, %v1533_v53  ;;  %v3768_v27 = vld [vmem:[%s2537_s30 + $0xc8] sm:$0xff] }
 0x18d   : > { %v3757_v30 = vpop.permute.xlu1 %908  ;;  %v1319_v15 = vsel %vm1301_vm2, %v3768_v27, %v4578_v10  ;;  %v3817_v10 = vld [vmem:[%s2537_s30 + $0xd8] sm:$0xff] }
 0x18e   : > { %v3761_v61 = vpop.permute.xlu0 %841  ;;  %v1352_v48 = vsel %vm1334_vm3, %v1319_v15, %v3321_v38  ;;  %v4582_v15 = vld [vmem:[#allocation64_spill] sm:$0xff] }
 0x18f   : > { %922 = vrot.lane.b32.xlu1 %v4576_v25, %s2451_s8  ;;  %v1385_v2 = vsel %vm1367_vm5, %v1352_v48, %v3536_v22  ;;  %v1320_v55 = vsel %vm1301_vm2, %v3817_v10, %v4582_v15  ;;  %v2362_v48 = vld [vmem:[%s2537_s30 + $0x18] sm:$0xff] }
 0x190   : > { %1251 = vrot.lane.b32.xlu0 %v4579_v52, %s2454_s6  ;;  %v1418_v45 = vsel %vm1400_vm6, %v1385_v2, %v3678_v57  ;;  %v1353_v2 = vsel %vm1334_vm3, %v1320_v55, %v3331_v50  ;;  %v4587_v15 = vld [vmem:[#allocation56_spill] sm:$0xff]  ;;  %v4588_v55 = vld [vmem:[#allocation39_spill] sm:$0xff] }
 0x191   : > { %v1208_v58 = vpop.permute.xlu1 %1207  ;;  %v1451_v38 = vsel %vm1433_vm7, %v1418_v45, %v3690_v11 }
 0x192   : > { %v1534_v49 = vsel %vm1532_vm10, %v1501_v62, %v1208_v58  ;;  %v941_v63 = vpop.permute.xlu0 %940  ;;  %v1484_v22 = vsel %vm1466_vm8, %v1451_v38, %v3700_v13  ;;  %v4584_v62 = vld [vmem:[#allocation52_spill] sm:$0xff] }
 0x193   : > { %1018 = vrot.lane.b32.xlu1 %v2357_v14, %s2452_s9  ;;  %2227 = vmatmul.mubr.msk.f32.vlgmr.msra.gmra.mxu0 %vm1577_vm11, %v1534_v49  ;;  %v1517_v29 = vsel %vm1499_vm9, %v1484_v22, %v1139_v43  ;;  %v2360_v43 = vld [vmem:[%s2537_s30 + $0x158] sm:$0xff]  ;;  %v1304_v58 = vsel %vm1301_vm2, %v2362_v48, %v4584_v62  ;;  %v4586_v49 = vld [vmem:[#allocation69_spill] sm:$0xff]  ;;  %v1386_v14 = vsel %vm1367_vm5, %v1353_v2, %v3546_v17 }
 0x194   : > { %954 = vrot.lane.b32.xlu0 %v4579_v52, %s2451_s8  ;;  %v4583_v52 = vld [vmem:[#allocation57_spill] sm:$0xff]  ;;  %v1337_v45 = vsel %vm1334_vm3, %v1304_v58, %v4586_v49  ;;  %v4591_v49 = vld [vmem:[#allocation55_spill] sm:$0xff] }
 0x195   : > { %v911_v4 = vpop.permute.xlu1 %910  ;;  %v1370_v22 = vsel %vm1367_vm5, %v1337_v45, %v3458_v37  ;;  %v3875_v2 = vld [vmem:[%s2537_s30 + $0xe0] sm:$0xff] }
 0x196   : > { %v1240_v3 = vpop.permute.xlu0 %1239  ;;  %v1403_v50 = vsel %vm1400_vm6, %v1370_v22, %v3634_v31 }
 0x197   : > { %v1550_v57 = vsel %vm1532_vm10, %v1517_v29, %v1240_v3  ;;  %1020 = vrot.lane.b32.xlu1 %v2358_v59, %s2452_s9  ;;  %v1419_v29 = vsel %vm1400_vm6, %v1386_v14, %v3706_v6  ;;  %v1436_v17 = vsel %vm1433_vm7, %v1403_v50, %v3757_v30  ;;  %v2365_v50 = vld [vmem:[%s2537_s30 + $0xa8] sm:$0xff] }
 0x198   : > { %1050 = vrot.lane.b32.xlu0 %v2359_v24, %s2452_s9  ;;  %2251 = vmatmul.mubr.msk.f32.vlgmr.msra.gmra.mxu1 %vm1577_vm11, %v1550_v57  ;;  %v1452_v57 = vsel %vm1433_vm7, %v1419_v29, %v941_v63 }
 0x199   : > { %v1007_v11 = vpop.permute.xlu1 %1006 }
 0x19a   : > { %v3800_v25 = vpop.permute.xlu0 %942  ;;  %v1469_v37 = vsel %vm1466_vm8, %v1436_v17, %v1007_v11  ;;  %v4589_v11 = vld [vmem:[#allocation68_spill] sm:$0xff] }
 0x19b   : > { %1120 = vrot.lane.b32.xlu1 %v4527_v56, %s2453_s21 }
 0x19c   : > { %1052 = vrot.lane.b32.xlu0 %v2360_v43, %s2452_s9 }
 0x19d   : > { %v1009_v13 = vpop.permute.xlu1 %1008 }
 0x19e   : > { %v1039_v53 = vpop.permute.xlu0 %1038 }
 0x19f   : > { %855 = vrot.lane.b32.xlu1 %v4580_v51, %s2450_s7  ;;  %v1485_v59 = vsel %vm1466_vm8, %v1452_v57, %v1039_v53 }
 0x1a0   : > { %1152 = vrot.lane.b32.xlu0 %v4580_v51, %s2453_s21  ;;  %v2363_v51 = vld [vmem:[%s2537_s30 + $0x20] sm:$0xff] }
 0x1a1   : > { %v1109_v42 = vpop.permute.xlu1 %1108  ;;  %v1305_v30 = vsel %vm1301_vm2, %v2363_v51, %v4587_v15  ;;  %v4594_v15 = vld [vmem:[#allocation29_spill] sm:$0xff] }
 0x1a2   : > { %v1041_v47 = vpop.permute.xlu0 %1040  ;;  %v1502_v31 = vsel %vm1499_vm9, %v1469_v37, %v1109_v42  ;;  %v2367_v37 = vld [vmem:[%s2537_s30 + $0x168] sm:$0xff] }
 0x1a3   : > { %1154 = vrot.lane.b32.xlu1 %v4581_v60, %s2453_s21 }
 0x1a4   : > { %1122 = vrot.lane.b32.xlu0 %v4526_v44, %s2453_s21  ;;  %v4585_v44 = vld [vmem:[#allocation40_spill] sm:$0xff] }
 0x1a5   : > { %v3814_v56 = vpop.permute.xlu1 %843 }
 0x1a6   : > { %v1141_v54 = vpop.permute.xlu0 %1140 }
 0x1a7   : > { %1253 = vrot.lane.b32.xlu1 %v4583_v52, %s2454_s6  ;;  %v1518_v6 = vsel %vm1499_vm9, %v1485_v59, %v1141_v54  ;;  %v2366_v59 = vld [vmem:[%s2537_s30 + $0xb0] sm:$0xff] }
 0x1a8   : > { %1221 = vrot.lane.b32.xlu0 %v4585_v44, %s2454_s6 }
 0x1a9   : > { %v1143_v38 = vpop.permute.xlu1 %1142 }
 0x1aa   : > { %v1111_v3 = vpop.permute.xlu0 %1110 }
 0x1ab   : > { %924 = vrot.lane.b32.xlu1 %v4585_v44, %s2451_s8 }
 0x1ac   : > { %857 = vrot.lane.b32.xlu0 %v4581_v60, %s2450_s7  ;;  %v1338_v60 = vsel %vm1334_vm3, %v1305_v30, %v4589_v11  ;;  %v4595_v30 = vld [vmem:[#allocation12_spill] sm:$0xff] }
 0x1ad   : > { %v1242_v24 = vpop.permute.xlu1 %1241  ;;  %v1371_v42 = vsel %vm1367_vm5, %v1338_v60, %v3456_v9  ;;  %v4596_v11 = vld [vmem:[#allocation60_spill] sm:$0xff]  ;;  %v4597_v60 = vld [vmem:[#allocation42_spill] sm:$0xff] }
 0x1ae   : > { %v1551_v63 = vsel %vm1532_vm10, %v1518_v6, %v1242_v24  ;;  %v1210_v43 = vpop.permute.xlu0 %1209  ;;  %v1404_v48 = vsel %vm1400_vm6, %v1371_v42, %v3632_v36  ;;  %v4592_v24 = vld [vmem:[#allocation13_spill] sm:$0xff] }
 0x1af   : > { %v1535_v53 = vsel %vm1532_vm10, %v1502_v31, %v1210_v43  ;;  %1223 = vrot.lane.b32.xlu1 %v4588_v55, %s2454_s6  ;;  %2253 = vmatprep.mubr.msk.f32.mxu1 %vm1577_vm11, %v1551_v63  ;;  %v1437_v58 = vsel %vm1433_vm7, %v1404_v48, %v911_v4  ;;  %v4593_v63 = vld [vmem:[#allocation30_spill] sm:$0xff]  ;;  %v1421_v48 = vsel %vm1400_vm6, %v3558_v8, %v3814_v56 }
 0x1b0   : > { %956 = vrot.lane.b32.xlu0 %v4583_v52, %s2451_s8  ;;  %2229 = vmatprep.mubr.msk.f32.mxu0 %vm1577_vm11, %v1535_v53  ;;  %v4590_v52 = vld [vmem:[#allocation63_spill] sm:$0xff]  ;;  %v1470_v9 = vsel %vm1466_vm8, %v1437_v58, %v1009_v13 }
 0x1b1   : > { %v913_v54 = vpop.permute.xlu1 %912  ;;  %v1321_v44 = vsel %vm1301_vm2, %v3875_v2, %v4590_v52  ;;  %v1503_v45 = vsel %vm1499_vm9, %v1470_v9, %v1111_v3  ;;  %v1405_v52 = vsel %vm1400_vm6, %v3470_v19, %v3642_v0 }
 0x1b2   : > { %v3869_v62 = vpop.permute.xlu0 %845  ;;  %v1354_v36 = vsel %vm1334_vm3, %v1321_v44, %v3329_v39  ;;  %v1438_v9 = vsel %vm1433_vm7, %v1405_v52, %v913_v54  ;;  %v4603_v52 = vld [vmem:[#allocation14_spill] sm:$0xff] }
 0x1b3   : > { %926 = vrot.lane.b32.xlu1 %v4588_v55, %s2451_s8  ;;  %v1387_v14 = vsel %vm1367_vm5, %v1354_v36, %v3544_v1 }
 0x1b4   : > { %1255 = vrot.lane.b32.xlu0 %v4591_v49, %s2454_s6  ;;  %v1420_v13 = vsel %vm1400_vm6, %v1387_v14, %v3761_v61  ;;  %v1406_v14 = vsel %vm1400_vm6, %v3466_v16, %v3640_v20  ;;  %v1422_v16 = vsel %vm1400_vm6, %v3554_v35, %v3869_v62  ;;  %v4600_v35 = vld [vmem:[#allocation71_spill] sm:$0xff]  ;;  %v4601_v62 = vld [vmem:[#allocation70_spill] sm:$0xff] }
 0x1b5   : > { %v1212_v4 = vpop.permute.xlu1 %1211  ;;  %v1453_v39 = vsel %vm1433_vm7, %v1420_v13, %v3800_v25  ;;  %v4598_v13 = vld [vmem:[#allocation59_spill] sm:$0xff] }
 0x1b6   : > { %v1536_v22 = vsel %vm1532_vm10, %v1503_v45, %v1212_v4  ;;  %v945_v29 = vpop.permute.xlu0 %944  ;;  %v1486_v1 = vsel %vm1466_vm8, %v1453_v39, %v1041_v47  ;;  %v2368_v47 = vld [vmem:[%s2537_s30 + $0x170] sm:$0xff]  ;;  %v4599_v39 = vld [vmem:[#allocation41_spill] sm:$0xff] }
 0x1b7   : > { %1022 = vrot.lane.b32.xlu1 %v2365_v50, %s2452_s9  ;;  %2230 = vmatmul.mubr.msk.f32.gmra.mxu0 %vm1577_vm11, %v1536_v22  ;;  %v1519_v57 = vsel %vm1499_vm9, %v1486_v1, %v1143_v38  ;;  %v1454_v44 = vsel %vm1433_vm7, %v1421_v48, %v945_v29 }
 0x1b8   : > { %958 = vrot.lane.b32.xlu0 %v4591_v49, %s2451_s8 }
 0x1b9   : > { %v915_v3 = vpop.permute.xlu1 %914 }
 0x1ba   : > { %v1244_v17 = vpop.permute.xlu0 %1243  ;;  %v1439_v29 = vsel %vm1433_vm7, %v1406_v14, %v915_v3 }
 0x1bb   : > { %v1552_v61 = vsel %vm1532_vm10, %v1519_v57, %v1244_v17  ;;  %1024 = vrot.lane.b32.xlu1 %v2366_v59, %s2452_s9 }
 0x1bc   : > { %1054 = vrot.lane.b32.xlu0 %v2367_v37, %s2452_s9  ;;  %2254 = vmatmul.mubr.msk.f32.gmra.mxu1 %vm1577_vm11, %v1552_v61 }
 0x1bd   : > { %v1011_v25 = vpop.permute.xlu1 %1010 }
 0x1be   : > { %v947_v6 = vpop.permute.xlu0 %946  ;;  %v1471_v36 = vsel %vm1466_vm8, %v1438_v9, %v1011_v25 }
 0x1bf   : > { %1124 = vrot.lane.b32.xlu1 %v4592_v24, %s2453_s21  ;;  %v1455_v20 = vsel %vm1433_vm7, %v1422_v16, %v947_v6 }
 0x1c0   : > { %1056 = vrot.lane.b32.xlu0 %v2368_v47, %s2452_s9  ;;  %v799_v47 = vrot.slane %v4601_v62, 1 }
 0x1c1   : > { %v1013_v38 = vpop.permute.xlu1 %1012 }
 0x1c2   : > { %v1043_v31 = vpop.permute.xlu0 %1042  ;;  %v1472_v50 = vsel %vm1466_vm8, %v1439_v29, %v1013_v38  ;;  %v798_v38 = vrot.slane %v4600_v35, 1 }
 0x1c3   : > { %859 = vrot.lane.b32.xlu1 %v4593_v63, %s2450_s7  ;;  %v1487_v49 = vsel %vm1466_vm8, %v1454_v44, %v1043_v31 }
 0x1c4   : > { %1156 = vrot.lane.b32.xlu0 %v4593_v63, %s2453_s21  ;;  %v800_v63 = vsel %vm345_vm0, %v798_v38, %v799_v47 }
 0x1c5   : > { %v1113_v43 = vpop.permute.xlu1 %1112 }
 0x1c6   : > { %v1045_v51 = vpop.permute.xlu0 %1044  ;;  %v1504_v45 = vsel %vm1499_vm9, %v1471_v36, %v1113_v43 }
 0x1c7   : > { %1158 = vrot.lane.b32.xlu1 %v4594_v15, %s2453_s21  ;;  %v1488_v3 = vsel %vm1466_vm8, %v1455_v20, %v1045_v51  ;;  %v293_v51 = vld [vmem:[%s2537_s30 + $0x190] sm:$0x3] }
 0x1c8   : > { %1126 = vrot.lane.b32.xlu0 %v4595_v30, %s2453_s21 }
 0x1c9   : > { %v3918_v53 = vpop.permute.xlu1 %847 }
 0x1ca   : > { %v1145_v55 = vpop.permute.xlu0 %1144 }
 0x1cb   : > { %1257 = vrot.lane.b32.xlu1 %v4596_v11, %s2454_s6  ;;  %v1520_v8 = vsel %vm1499_vm9, %v1487_v49, %v1145_v55  ;;  %v1423_v49 = vsel %vm1400_vm6, %v3570_v12, %v3918_v53 }
 0x1cc   : > { %1225 = vrot.lane.b32.xlu0 %v4597_v60, %s2454_s6 }
 0x1cd   : > { %v1147_v42 = vpop.permute.xlu1 %1146 }
 0x1ce   : > { %v1115_v58 = vpop.permute.xlu0 %1114  ;;  %v1521_v37 = vsel %vm1499_vm9, %v1488_v3, %v1147_v42  ;;  %v899_v42 = vrot.slane %v4600_v35, 2 }
 0x1cf   : > { %861 = vrot.lane.b32.xlu1 %v4594_v15, %s2450_s7  ;;  %v1505_v1 = vsel %vm1499_vm9, %v1472_v50, %v1115_v58  ;;  %v1408_v50 = vsel %vm1400_vm6, %v3478_v28, %v3648_v26 }
 0x1d0   : > { %829 = vrot.lane.b32.xlu0 %v4595_v30, %s2450_s7  ;;  %v4602_v30 = vld [vmem:[#allocation15_spill] sm:$0xff] }
 0x1d1   : > { %v1246_v56 = vpop.permute.xlu1 %1245 }
 0x1d2   : > { %v1553_v19 = vsel %vm1532_vm10, %v1520_v8, %v1246_v56  ;;  %v1214_v0 = vpop.permute.xlu0 %1213  ;;  %v1407_v8 = vsel %vm1400_vm6, %v3482_v41, %v3650_v21 }
 0x1d3   : > { %v1537_v4 = vsel %vm1532_vm10, %v1504_v45, %v1214_v0  ;;  %960 = vrot.lane.b32.xlu1 %v4596_v11, %s2451_s8  ;;  %2256 = vmatprep.mubr.msk.f32.mxu1 %vm1577_vm11, %v1553_v19  ;;  %v4604_v0 = vld [vmem:[#allocation44_spill] sm:$0xff] }
 0x1d4   : > { %928 = vrot.lane.b32.xlu0 %v4597_v60, %s2451_s8  ;;  %2232 = vmatprep.mubr.msk.f32.mxu0 %vm1577_vm11, %v1537_v4  ;;  %v900_v60 = vrot.slane %v4601_v62, 2 }
 0x1d5   : > { %v917_v54 = vpop.permute.xlu1 %916 }
 0x1d6   : > { %v3951_v22 = vpop.permute.xlu0 %849  ;;  %v901_v44 = vsel %vm522_vm1, %v899_v42, %v900_v60  ;;  %v1440_v45 = vsel %vm1433_vm7, %v1407_v8, %v917_v54  ;;  %v902_v54 = vrot.slane %v293_v51, 2 }
 0x1d7   : > { %1259 = vrot.lane.b32.xlu1 %v4598_v13, %s2454_s6  ;;  %v1424_v26 = vsel %vm1400_vm6, %v3566_v33, %v3951_v22  ;;  %v294_v33 = vld [vmem:[%s2537_s30 + $0x198] sm:$0xff] }
 0x1d8   : > { %1227 = vrot.lane.b32.xlu0 %v4599_v39, %s2454_s6 }
 0x1d9   : > { %v1216_v57 = vpop.permute.xlu1 %1215 }
 0x1da   : > { %v1538_v17 = vsel %vm1532_vm10, %v1505_v1, %v1216_v57  ;;  %v949_v61 = vpop.permute.xlu0 %948 }
 0x1db   : > { %962 = vrot.lane.b32.xlu1 %v4598_v13, %s2451_s8  ;;  %2233 = vmatmul.mubr.msk.f32.gmra.mxu0 %vm1577_vm11, %v1538_v17  ;;  %v1456_v56 = vsel %vm1433_vm7, %v1423_v49, %v949_v61  ;;  %v903_v17 = vsel %vm522_vm1, %v900_v60, %v902_v54 }
 0x1dc   : > { %930 = vrot.lane.b32.xlu0 %v4599_v39, %s2451_s8 }
 0x1dd   : > { %v919_v59 = vpop.permute.xlu1 %918 }
 0x1de   : > { %v1248_v25 = vpop.permute.xlu0 %1247  ;;  %v1441_v1 = vsel %vm1433_vm7, %v1408_v50, %v919_v59  ;;  %v4605_v59 = vld [vmem:[#allocation43_spill] sm:$0xff] }
 0x1df   : > { %v1554_v24 = vsel %vm1532_vm10, %v1521_v37, %v1248_v25  ;;  %1058 = vrot.lane.b32.xlu1 %v4600_v35, %s2452_s9 }
 0x1e0   : > { %1026 = vrot.lane.b32.xlu0 %v3709_v32, %s2452_s9  ;;  %2257 = vmatmul.mubr.msk.f32.gmra.mxu1 %vm1577_vm11, %v1554_v24  ;;  %v801_v32 = vrot.slane %v293_v51, 1 }
 0x1e1   : > { %v1015_v6 = vpop.permute.xlu1 %1014 }
 0x1e2   : > { %v951_v31 = vpop.permute.xlu0 %950  ;;  %v1473_v4 = vsel %vm1466_vm8, %v1440_v45, %v1015_v6  ;;  %v1099_v6 = vrot.slane %v294_v33, 1 }
 0x1e3   : > { %1060 = vrot.lane.b32.xlu1 %v4601_v62, %s2452_s9  ;;  %v1457_v3 = vsel %vm1433_vm7, %v1424_v26, %v951_v31 }
 0x1e4   : > { %1028 = vrot.lane.b32.xlu0 %v3768_v27, %s2452_s9  ;;  %v802_v27 = vsel %vm345_vm0, %v799_v47, %v801_v32  ;;  %v295_v47 = vld [vmem:[%s2537_s30 + $0x1a0] sm:$0xff] }
 0x1e5   : > { %v1017_v43 = vpop.permute.xlu1 %1016  ;;  %v1100_v31 = vrot.slane %v295_v47, 1  ;;  %v1201_v60 = vrot.slane %v295_v47, 2 }
 0x1e6   : > { %v1047_v15 = vpop.permute.xlu0 %1046  ;;  %v1474_v57 = vsel %vm1466_vm8, %v1441_v1, %v1017_v43  ;;  %v296_v43 = vld [vmem:[%s2537_s30 + $0x1a8] sm:$0x3]  ;;  %s221_s30 = sand.u32 1, %s2429_s13  }
 0x1e7   : > { %1160 = vrot.lane.b32.xlu1 %v800_v63, %s2453_s21  ;;  %v1489_v19 = vsel %vm1466_vm8, %v1456_v56, %v1047_v15  ;;  %v1101_v15 = vsel %vm345_vm0, %v1099_v6, %v1100_v31  ;;  %s4295_s15 = scalar_lea.sflag [#allocation3], %s221_s30 }
 0x1e8   : > { %1128 = vrot.lane.b32.xlu0 %v4602_v30, %s2453_s21 }
 0x1e9   : > { %v1117_v55 = vpop.permute.xlu1 %1116 }
 0x1ea   : > { %v1049_v11 = vpop.permute.xlu0 %1048  ;;  %v1506_v14 = vsel %vm1499_vm9, %v1473_v4, %v1117_v55 }
 0x1eb   : > { %863 = vrot.lane.b32.xlu1 %v800_v63, %s2450_s7  ;;  %v1490_v37 = vsel %vm1466_vm8, %v1457_v3, %v1049_v11  ;;  %v1200_v11 = vrot.slane %v294_v33, 2 }
 0x1ec   : > { %831 = vrot.lane.b32.xlu0 %v4602_v30, %s2450_s7  ;;  %v1102_v30 = vrot.slane %v296_v43, 1 }
 0x1ed   : > { %v3995_v48 = vpop.permute.xlu1 %851 }
 0x1ee   : > { %v1149_v58 = vpop.permute.xlu0 %1148  ;;  %v1103_v42 = vsel %vm345_vm0, %v1100_v31, %v1102_v30 }
 0x1ef   : > { %1162 = vrot.lane.b32.xlu1 %v802_v27, %s2453_s21  ;;  %v1522_v12 = vsel %vm1499_vm9, %v1489_v19, %v1149_v58 }
 0x1f0   : > { %1130 = vrot.lane.b32.xlu0 %v4603_v52, %s2453_s21 }
 0x1f1   : > { %v1151_v9 = vpop.permute.xlu1 %1150 }
 0x1f2   : > { %v1119_v36 = vpop.permute.xlu0 %1118  ;;  %v1523_v24 = vsel %vm1499_vm9, %v1490_v37, %v1151_v9  ;;  %v1425_v9 = vsel %vm1400_vm6, %v3582_v46, %v3995_v48 }
 0x1f3   : > { %1261 = vrot.lane.b32.xlu1 %v901_v44, %s2454_s6  ;;  %v1507_v61 = vsel %vm1499_vm9, %v1474_v57, %v1119_v36  ;;  %v1409_v36 = vsel %vm1400_vm6, %v3494_v23, %v3658_v5 }
 0x1f4   : > { %1229 = vrot.lane.b32.xlu0 %v4604_v0, %s2454_s6 }
 0x1f5   : > { %v1250_v53 = vpop.permute.xlu1 %1249 }
 0x1f6   : > { %v1555_v41 = vsel %vm1532_vm10, %v1522_v12, %v1250_v53  ;;  %v1218_v21 = vpop.permute.xlu0 %1217  ;;  %v4607_v12 = vld [vmem:[#allocation5_spill] sm:$0xff] }
 0x1f7   : > { %v1539_v29 = vsel %vm1532_vm10, %v1506_v14, %v1218_v21  ;;  %865 = vrot.lane.b32.xlu1 %v802_v27, %s2450_s7  ;;  %2259 = vmatprep.mubr.msk.f32.mxu1 %vm1577_vm11, %v1555_v41  ;;  %v1410_v53 = vsel %vm1400_vm6, %v4607_v12, %v3656_v34  ;;  %v4148_v12 = vld [vmem:[%s4343_s2] ss:$0 sm:$0xff] }
 0x1f8   : > { %833 = vrot.lane.b32.xlu0 %v4603_v52, %s2450_s7  ;;  %2235 = vmatprep.mubr.msk.f32.mxu0 %vm1577_vm11, %v1539_v29  ;;  %v1203_v52 = vrot.slane %v296_v43, 2 }
 0x1f9   : > { %v921_v13 = vpop.permute.xlu1 %920 }
 0x1fa   : > { %v4026_v39 = vpop.permute.xlu0 %853  ;;  %v1442_v56 = vsel %vm1433_vm7, %v1409_v36, %v921_v13  ;;  %v1204_v45 = vsel %vm522_vm1, %v1201_v60, %v1203_v52 }
 0x1fb   : > { %964 = vrot.lane.b32.xlu1 %v901_v44, %s2451_s8 }
 0x1fc   : > { %932 = vrot.lane.b32.xlu0 %v4604_v0, %s2451_s8 }
 0x1fd   : > { %v1220_v16 = vpop.permute.xlu1 %1219 }
 0x1fe   : > { %v1540_v20 = vsel %vm1532_vm10, %v1507_v61, %v1220_v16  ;;  %v953_v28 = vpop.permute.xlu0 %952 }
 0x1ff   : > { %1263 = vrot.lane.b32.xlu1 %v903_v17, %s2454_s6  ;;  %2236 = vmatmul.mubr.msk.f32.gmra.mxu0 %vm1577_vm11, %v1540_v20  ;;  %v1458_v8 = vsel %vm1433_vm7, %v1425_v9, %v953_v28  ;;  %v4614_v9 = vld [vmem:[#allocation6_spill] sm:$0xff] }
 0x200   : > { %1231 = vrot.lane.b32.xlu0 %v4605_v59, %s2454_s6 }
 0x201   : > { %v923_v25 = vpop.permute.xlu1 %922 }
 0x202   : > { %v1252_v35 = vpop.permute.xlu0 %1251  ;;  %v1443_v41 = vsel %vm1433_vm7, %v1410_v53, %v923_v25 }
 0x203   : > { %v1556_v62 = vsel %vm1532_vm10, %v1523_v24, %v1252_v35  ;;  %966 = vrot.lane.b32.xlu1 %v903_v17, %s2451_s8 }
 0x204   : > { %934 = vrot.lane.b32.xlu0 %v4605_v59, %s2451_s8  ;;  %2260 = vmatmul.mubr.msk.f32.gmra.mxu1 %vm1577_vm11, %v1556_v62  ;;  %v4609_v62 = vld [vmem:[#allocation26_spill] sm:$0xff] }
 0x205   : > { %v1019_v22 = vpop.permute.xlu1 %1018 }
 0x206   : > { %v955_v38 = vpop.permute.xlu0 %954  ;;  %v1475_v46 = vsel %vm1466_vm8, %v1442_v56, %v1019_v22 }
 0x207   : > { %1062 = vrot.lane.b32.xlu1 %v294_v33, %s2452_s9 }
 0x208   : > { %1030 = vrot.lane.b32.xlu0 %v3817_v10, %s2452_s9  ;;  %v4606_v10 = vld [vmem:[#allocation17_spill] sm:$0xff] }
 0x209   : > { %v1021_v63 = vpop.permute.xlu1 %1020 }
 0x20a   : > { %v1051_v51 = vpop.permute.xlu0 %1050  ;;  %v1476_v21 = vsel %vm1466_vm8, %v1443_v41, %v1021_v63 }
 0x20b   : > { %1064 = vrot.lane.b32.xlu1 %v295_v47, %s2452_s9  ;;  %v4610_v47 = vld [vmem:[#allocation45_spill] sm:$0xff] }
 0x20c   : > { %1032 = vrot.lane.b32.xlu0 %v3875_v2, %s2452_s9  ;;  %v1202_v2 = vsel %vm522_vm1, %v1200_v11, %v1201_v60  ;;  %s2137_s9 = sshll.u32 %s221_s30, 8 }
 0x20d   : > { %v1121_v32 = vpop.permute.xlu1 %1120  ;;  %s4155_s10 = scalar_lea.vmem [#allocation2], %s2137_s9 }
 0x20e   : > { %v1053_v55 = vpop.permute.xlu0 %1052  ;;  %v1508_v23 = vsel %vm1499_vm9, %v1475_v46, %v1121_v32  ;;  %s2017_s18 = sshll.u32 %s4155_s10, 4  ;;  %s4289_s18 = int_to_ptr.vmem [resolvable:$true] %s2017_s18 }
 0x20f   : > { %1164 = vrot.lane.b32.xlu1 %v1101_v15, %s2453_s21  ;;  %s2369_s26 = scalar_lea.vmem %s4289_s18, 4096  ;;  %p2376_p1 = scmp.lt.s32.totalorder %s4289_s18, %s2374_s28 }
 0x210   : > { %1132 = vrot.lane.b32.xlu0 %v4606_v10, %s2453_s21  ;;  %p2370_p12 = scmp.ne.s32.totalorder %s4289_s18, %s2369_s26  ;;  %p2377_p2 = scmp.lt.s32.totalorder %s2375_s29, %s2369_s26 }
 0x211   : > { %v856_v27 = vpop.permute.xlu1 %855 }
 0x212   : > { %v1153_v58 = vpop.permute.xlu0 %1152  ;;  %v1427_v33 = vsel %vm1400_vm6, %v4609_v62, %v856_v27  ;;  %v4615_v62 = vld [vmem:[#allocation18_spill] sm:$0xff]  ;;  %p2371_p13 = pnand %p2370_p12, %p2517_p4  ;;  %p2378_p3 = por %p2377_p2, %p2376_p1 }
 0x213   : > { %1166 = vrot.lane.b32.xlu1 %v1103_v42, %s2453_s21 }
 0x214   : > { %1134 = vrot.lane.b32.xlu0 %v4530_v40, %s2453_s21  ;;  %v1491_v40 = vsel %vm1466_vm8, %v1458_v8, %v1051_v51  ;;  %p2372_p0 = pneg %p2371_p13 }
 0x215   : > { %v1155_v44 = vpop.permute.xlu1 %1154  ;;  %v1524_v48 = vsel %vm1499_vm9, %v1491_v40, %v1153_v58  ;;  %v4612_v58 = vld [vmem:[#allocation65_spill] sm:$0xff] }
 0x216   : > { %v1123_v49 = vpop.permute.xlu0 %1122  ;;  %p2379_p5 = pnand %p2378_p3, %p2372_p0 }
 0x217   : > { %1265 = vrot.lane.b32.xlu1 %v1202_v2, %s2454_s6  ;;  %v1509_v29 = vsel %vm1499_vm9, %v1476_v21, %v1123_v49 }
 0x218   : > { %1233 = vrot.lane.b32.xlu0 %v3005_v18, %s2454_s6 }
 0x219   : > { %v1254_v19 = vpop.permute.xlu1 %1253 }
 0x21a   : > { %v1557_v5 = vsel %vm1532_vm10, %v1524_v48, %v1254_v19  ;;  %v1222_v0 = vpop.permute.xlu0 %1221 }
 0x21b   : > { %v1541_v4 = vsel %vm1532_vm10, %v1508_v23, %v1222_v0  ;;  %1267 = vrot.lane.b32.xlu1 %v1204_v45, %s2454_s6  ;;  %2262 = vmatprep.mubr.msk.f32.mxu1 %vm1577_vm11, %v1557_v5 }
 0x21c   : > { %1235 = vrot.lane.b32.xlu0 %v3000_v7, %s2454_s6  ;;  %2238 = vmatprep.mubr.msk.f32.mxu0 %vm1577_vm11, %v1541_v4  ;;  %v4608_v7 = vld [vmem:[#allocation16_spill] sm:$0xff] }
 0x21d   : > { %v925_v18 = vpop.permute.xlu1 %924  ;;  %v1426_v1 = vsel %vm1400_vm6, %v4608_v7, %v4026_v39 }
 0x21e   : > { %v858_v14 = vpop.permute.xlu0 %857  ;;  %v1459_v57 = vsel %vm1433_vm7, %v1426_v1, %v955_v38  ;;  %v4611_v38 = vld [vmem:[#allocation7_spill] sm:$0xff] }
 0x21f   : > { %v1492_v34 = vsel %vm1466_vm8, %v1459_v57, %v1053_v55  ;;  %v1411_v6 = vsel %vm1400_vm6, %v4611_v38, %v4610_v47  ;;  %v1428_v2 = vsel %vm1400_vm6, %v4612_v58, %v858_v14  ;;  %v4616_v47 = vld [vmem:[#allocation21_spill] sm:$0xff] }
 0x220   : > { %v1525_v61 = vsel %vm1499_vm9, %v1492_v34, %v1155_v44  ;;  %v1444_v63 = vsel %vm1433_vm7, %v1411_v6, %v925_v18  ;;  %v4613_v44 = vld [vmem:[#allocation31_spill] sm:$0xff]  ;;  %v4617_v38 = vld [vmem:[#allocation9_spill] sm:$0xff] }
 0x221   : > { %v1224_v54 = vpop.permute.xlu1 %1223  ;;  %v1412_v49 = vsel %vm1400_vm6, %v4614_v9, %v4613_v44  ;;  %v1413_v6 = vsel %vm1400_vm6, %v4617_v38, %v4616_v47  ;;  %v4619_v9 = vld [vmem:[#allocation8_spill] sm:$0xff] }
 0x222   : > { %v1542_v13 = vsel %vm1532_vm10, %v1509_v29, %v1224_v54  ;;  %v957_v50 = vpop.permute.xlu0 %956 }
 0x223   : > { %2239 = vmatmul.mubr.msk.f32.gmra.mxu0 %vm1577_vm11, %v1542_v13  ;;  %v1460_v31 = vsel %vm1433_vm7, %v1427_v33, %v957_v50 }
 0x225   : > { %v927_v17 = vpop.permute.xlu1 %926 }
 0x226   : > { %v1256_v16 = vpop.permute.xlu0 %1255  ;;  %v1445_v8 = vsel %vm1433_vm7, %v1412_v49, %v927_v17 }
 0x227   : > { %v1558_v20 = vsel %vm1532_vm10, %v1525_v61, %v1256_v16 }
 0x228   : > { %2263 = vmatmul.mubr.msk.f32.gmra.mxu1 %vm1577_vm11, %v1558_v20 }
 0x229   : > { %v1023_v28 = vpop.permute.xlu1 %1022 }
 0x22a   : > { %v959_v26 = vpop.permute.xlu0 %958  ;;  %v1477_v51 = vsel %vm1466_vm8, %v1444_v63, %v1023_v28 }
 0x22b   : > { %v1461_v36 = vsel %vm1433_vm7, %v1428_v2, %v959_v26  ;;  %v4618_v2 = vld [vmem:[#allocation19_spill] sm:$0xff] }
 0x22d   : > { %v1025_v3 = vpop.permute.xlu1 %1024 }
 0x22e   : > { %v1055_v59 = vpop.permute.xlu0 %1054  ;;  %v1478_v40 = vsel %vm1466_vm8, %v1445_v8, %v1025_v3 }
 0x22f   : > { %v1493_v43 = vsel %vm1466_vm8, %v1460_v31, %v1055_v59 }
 0x231   : > { %v1125_v37 = vpop.permute.xlu1 %1124 }
 0x232   : > { %v1057_v39 = vpop.permute.xlu0 %1056  ;;  %v1510_v32 = vsel %vm1499_vm9, %v1477_v51, %v1125_v37 }
 0x233   : > { %v1494_v56 = vsel %vm1466_vm8, %v1461_v36, %v1057_v39 }
 0x235   : > { %v4108_v25 = vpop.permute.xlu1 %859 }
 0x236   : > { %v1157_v24 = vpop.permute.xlu0 %1156  ;;  %v1429_v33 = vsel %vm1400_vm6, %v4615_v62, %v4108_v25 }
 0x237   : > { %v1526_v15 = vsel %vm1499_vm9, %v1493_v43, %v1157_v24 }
 0x239   : > { %v1159_v35 = vpop.permute.xlu1 %1158 }
 0x23a   : > { %v1127_v22 = vpop.permute.xlu0 %1126  ;;  %v1527_v45 = vsel %vm1499_vm9, %v1494_v56, %v1159_v35 }
 0x23b   : > { %v1511_v48 = vsel %vm1499_vm9, %v1478_v40, %v1127_v22 }
 0x23d   : > { %v1258_v30 = vpop.permute.xlu1 %1257 }
 0x23e   : > { %v1559_v55 = vsel %vm1532_vm10, %v1526_v15, %v1258_v30  ;;  %v1226_v11 = vpop.permute.xlu0 %1225 }
 0x23f   : > { %v1543_v60 = vsel %vm1532_vm10, %v1510_v32, %v1226_v11  ;;  %2265 = vmatprep.mubr.msk.f32.mxu1 %vm1577_vm11, %v1559_v55 }
 0x240   : > { %2241 = vmatprep.mubr.msk.f32.mxu0 %vm1577_vm11, %v1543_v60 }
 0x241   : > { %v4125_v10 = vpop.permute.xlu1 %861 }
 0x242   : > { %v4127_v42 = vpop.permute.xlu0 %829 }
 0x243   : > { %v1414_v49 = vsel %vm1400_vm6, %v4619_v9, %v4127_v42 }
 0x245   : > { %v961_v27 = vpop.permute.xlu1 %960 }
 0x246   : > { %v929_v52 = vpop.permute.xlu0 %928  ;;  %v1462_v31 = vsel %vm1433_vm7, %v1429_v33, %v961_v27  ;;  %v4621_v33 = vld [vmem:[#allocation11_spill] sm:$0xff] }
 0x247   : > { %v1446_v63 = vsel %vm1433_vm7, %v1413_v6, %v929_v52  ;;  %v1430_v52 = vsel %vm1400_vm6, %v4618_v2, %v4125_v10 }
 0x249   : > { %v1260_v46 = vpop.permute.xlu1 %1259 }
 0x24a   : > { %v1560_v19 = vsel %vm1532_vm10, %v1527_v45, %v1260_v46  ;;  %v1228_v23 = vpop.permute.xlu0 %1227 }
 0x24b   : > { %v1544_v5 = vsel %vm1532_vm10, %v1511_v48, %v1228_v23  ;;  %2266 = vmatmul.mubr.msk.f32.gmra.mxu1 %vm1577_vm11, %v1560_v19 }
 0x24c   : > { %2242 = vmatmul.mubr.msk.f32.gmra.mxu0 %vm1577_vm11, %v1544_v5 }
 0x24d   : > { %v963_v0 = vpop.permute.xlu1 %962 }
 0x24e   : > { %v931_v4 = vpop.permute.xlu0 %930  ;;  %v1463_v36 = vsel %vm1433_vm7, %v1430_v52, %v963_v0 }
 0x24f   : > { %v1447_v8 = vsel %vm1433_vm7, %v1414_v49, %v931_v4 }
 0x251   : > { %v1059_v18 = vpop.permute.xlu1 %1058 }
 0x252   : > { %v1027_v53 = vpop.permute.xlu0 %1026  ;;  %v1495_v43 = vsel %vm1466_vm8, %v1462_v31, %v1059_v18 }
 0x253   : > { %v2228_v14 = vpop.f32.mrf.mxu0  ;;  %v1479_v51 = vsel %vm1466_vm8, %v1446_v63, %v1027_v53 }
 0x254   : > { %v1750_v41 = vadd.f32 %v2228_v14, %v4148_v12 }
 0x255   : > { %v1061_v21 = vpop.permute.xlu1 %1060  ;;  %v1744_v29 = vpop.f32.mrf.mxu0 }
 0x256   : > { %v1904_v54 = vmax.f32 %v1750_v41, 0.0  ;;  %v1745_v13 = vadd.f32 %v4148_v12, %v1744_v29  ;;  %v1029_v50 = vpop.permute.xlu0 %1028  ;;  %v1496_v56 = vsel %vm1466_vm8, %v1463_v36, %v1061_v21 }
 0x257   : > { %v1480_v40 = vsel %vm1466_vm8, %v1447_v8, %v1029_v50 }
 0x258   : > { %v1936_v7 = vmin.f32 %v1904_v54, 6.0  ;;  %v1903_v1 = vmax.f32 %v1745_v13, 0.0  ;;  %v2252_v57 = vpop.f32.mrf.mxu1 }
 0x259   : > { %v1830_v34 = vadd.f32 %v2252_v57, %v4148_v12  ;;  %v1161_v17 = vpop.permute.xlu1 %1160 }
 0x25a   : > { %1968 = vst [vmem:[%s4155_s10 + $0x8] sm:$0xff] %v1936_v7  ;;  %v1935_v61 = vmin.f32 %v1903_v1, 6.0  ;;  %v1824_v16 = vpop.f32.mrf.mxu1  ;;  %v1129_v20 = vpop.permute.xlu0 %1128  ;;  %v1528_v15 = vsel %vm1499_vm9, %v1495_v43, %v1161_v17 }
 0x25b   : > { %v1920_v28 = vmax.f32 %v1830_v34, 0.0  ;;  %v1825_v26 = vadd.f32 %v4148_v12, %v1824_v16  ;;  %v1512_v32 = vsel %vm1499_vm9, %v1479_v51, %v1129_v20  ;;  %v4622_v51 = vld [vmem:[#allocation46_spill] sm:$0xff] }
 0x25c   : > { %1967 = vst [vmem:[%s4155_s10] sm:$0xff] %v1935_v61 }
 0x25d   : > { %v1952_v3 = vmin.f32 %v1920_v28, 6.0  ;;  %v1919_v59 = vmax.f32 %v1825_v26, 0.0  ;;  %v4160_v37 = vpop.permute.xlu1 %863 }
 0x25e   : > { %v4162_v39 = vpop.permute.xlu0 %831 }
 0x25f   : > { %1984 = vst [vmem:[%s4155_s10 + $0x88] sm:$0xff] %v1952_v3  ;;  %v1951_v24 = vmin.f32 %v1919_v59, 6.0 }
 0x261   : > { %1983 = vst [vmem:[%s4155_s10 + $0x80] sm:$0xff] %v1951_v24  ;;  %v1163_v35 = vpop.permute.xlu1 %1162  ;;  %v4620_v24 = vld [vmem:[#allocation32_spill] sm:$0xff] }
 0x262   : > { %v1131_v22 = vpop.permute.xlu0 %1130  ;;  %v1529_v45 = vsel %vm1499_vm9, %v1496_v56, %v1163_v35  ;;  %v1431_v35 = vsel %vm1400_vm6, %v4620_v24, %v4160_v37 }
 0x263   : > { %v1513_v48 = vsel %vm1499_vm9, %v1480_v40, %v1131_v22  ;;  %v1415_v22 = vsel %vm1400_vm6, %v4621_v33, %v4162_v39  ;;  %v4623_v39 = vld [vmem:[#allocation10_spill] sm:$0xff] }
 0x265   : > { %v1262_v30 = vpop.permute.xlu1 %1261 }
 0x266   : > { %v1561_v25 = vsel %vm1532_vm10, %v1528_v15, %v1262_v30  ;;  %v1230_v55 = vpop.permute.xlu0 %1229 }
 0x267   : > { %v1545_v11 = vsel %vm1532_vm10, %v1512_v32, %v1230_v55  ;;  %2268 = vmatprep.mubr.msk.f32.mxu1 %vm1577_vm11, %v1561_v25 }
 0x268   : > { %2244 = vmatprep.mubr.msk.f32.mxu0 %vm1577_vm11, %v1545_v11 }
 0x269   : > { %v866_v60 = vpop.permute.xlu1 %865 }
 0x26a   : > { %v834_v27 = vpop.permute.xlu0 %833  ;;  %v1432_v15 = vsel %vm1400_vm6, %v4622_v51, %v866_v60 }
 0x26b   : > { %v1416_v25 = vsel %vm1400_vm6, %v4623_v39, %v834_v27 }
 0x26d   : > { %v965_v58 = vpop.permute.xlu1 %964 }
 0x26e   : > { %v933_v44 = vpop.permute.xlu0 %932  ;;  %v1464_v47 = vsel %vm1433_vm7, %v1431_v35, %v965_v58 }
 0x26f   : > { %v1448_v38 = vsel %vm1433_vm7, %v1415_v22, %v933_v44 }
 0x271   : > { %v1264_v46 = vpop.permute.xlu1 %1263 }
 0x272   : > { %v1562_v10 = vsel %vm1532_vm10, %v1529_v45, %v1264_v46  ;;  %v1232_v19 = vpop.permute.xlu0 %1231 }
 0x273   : > { %v1546_v23 = vsel %vm1532_vm10, %v1513_v48, %v1232_v19  ;;  %2269 = vmatmul.mubr.msk.f32.gmra.mxu1 %vm1577_vm11, %v1562_v10 }
 0x274   : > { %2245 = vmatmul.mubr.msk.f32.gmra.mxu0 %vm1577_vm11, %v1546_v23 }
 0x275   : > { %v967_v42 = vpop.permute.xlu1 %966 }
 0x276   : > { %v935_v5 = vpop.permute.xlu0 %934  ;;  %v1465_v55 = vsel %vm1433_vm7, %v1432_v15, %v967_v42 }
 0x277   : > { %v2231_v0 = vpop.f32.mrf.mxu0  ;;  %v1449_v58 = vsel %vm1433_vm7, %v1416_v25, %v935_v5 }
 0x278   : > { %v1760_v4 = vadd.f32 %v2231_v0, %v4148_v12 }
 0x279   : > { %v1063_v18 = vpop.permute.xlu1 %1062  ;;  %v1754_v53 = vpop.f32.mrf.mxu0 }
 0x27a   : > { %v1906_v14 = vmax.f32 %v1760_v4, 0.0  ;;  %v1755_v41 = vadd.f32 %v4148_v12, %v1754_v53  ;;  %v1031_v21 = vpop.permute.xlu0 %1030  ;;  %v1497_v6 = vsel %vm1466_vm8, %v1464_v47, %v1063_v18 }
 0x27b   : > { %v1481_v31 = vsel %vm1466_vm8, %v1448_v38, %v1031_v21 }
 0x27c   : > { %v1938_v29 = vmin.f32 %v1906_v14, 6.0  ;;  %v1905_v54 = vmax.f32 %v1755_v41, 0.0  ;;  %v2255_v13 = vpop.f32.mrf.mxu1 }
 0x27d   : > { %v1840_v50 = vadd.f32 %v2255_v13, %v4148_v12  ;;  %v1065_v7 = vpop.permute.xlu1 %1064 }
 0x27e   : > { %1970 = vst [vmem:[%s4155_s10 + $0x18] sm:$0xff] %v1938_v29  ;;  %v1937_v1 = vmin.f32 %v1905_v54, 6.0  ;;  %v1834_v57 = vpop.f32.mrf.mxu1  ;;  %v1033_v34 = vpop.permute.xlu0 %1032  ;;  %v1498_v2 = vsel %vm1466_vm8, %v1465_v55, %v1065_v7 }
 0x27f   : > { %v1922_v17 = vmax.f32 %v1840_v50, 0.0  ;;  %v1835_v61 = vadd.f32 %v4148_v12, %v1834_v57  ;;  %v1482_v60 = vsel %vm1466_vm8, %v1449_v58, %v1033_v34 }
 0x280   : > { %1969 = vst [vmem:[%s4155_s10 + $0x10] sm:$0xff] %v1937_v1 }
 0x281   : > { %v1954_v16 = vmin.f32 %v1922_v17, 6.0  ;;  %v1921_v20 = vmax.f32 %v1835_v61, 0.0  ;;  %v1165_v28 = vpop.permute.xlu1 %1164 }
 0x282   : > { %v1133_v26 = vpop.permute.xlu0 %1132  ;;  %v1530_v63 = vsel %vm1499_vm9, %v1497_v6, %v1165_v28 }
 0x283   : > { %1986 = vst [vmem:[%s4155_s10 + $0x98] sm:$0xff] %v1954_v16  ;;  %v1953_v3 = vmin.f32 %v1921_v20, 6.0  ;;  %v1514_v37 = vsel %vm1499_vm9, %v1481_v31, %v1133_v26 }
 0x285   : > { %1985 = vst [vmem:[%s4155_s10 + $0x90] sm:$0xff] %v1953_v3  ;;  %v1167_v59 = vpop.permute.xlu1 %1166 }
 0x286   : > { %v1135_v62 = vpop.permute.xlu0 %1134  ;;  %v1531_v52 = vsel %vm1499_vm9, %v1498_v2, %v1167_v59 }
 0x287   : > { %v1515_v27 = vsel %vm1499_vm9, %v1482_v60, %v1135_v62 }
 0x289   : > { %v1266_v43 = vpop.permute.xlu1 %1265 }
 0x28a   : > { %v1563_v30 = vsel %vm1532_vm10, %v1530_v63, %v1266_v43  ;;  %v1234_v32 = vpop.permute.xlu0 %1233 }
 0x28b   : > { %v1547_v11 = vsel %vm1532_vm10, %v1514_v37, %v1234_v32  ;;  %2271 = vmatprep.mubr.msk.f32.mxu1 %vm1577_vm11, %v1563_v30 }
 0x28c   : > { %2247 = vmatprep.mubr.msk.f32.mxu0 %vm1577_vm11, %v1547_v11 }
 0x28d   : > { %v1268_v44 = vpop.permute.xlu1 %1267 }
 0x28e   : > { %v1564_v9 = vsel %vm1532_vm10, %v1531_v52, %v1268_v44  ;;  %v1236_v49 = vpop.permute.xlu0 %1235 }
 0x28f   : > { %v1548_v36 = vsel %vm1532_vm10, %v1515_v27, %v1236_v49  ;;  %2272 = vmatmul.mubr.msk.f32.gmra.mxu1 %vm1577_vm11, %v1564_v9 }
 0x290   : > { %2248 = vmatmul.mubr.msk.f32.gmra.mxu0 %vm1577_vm11, %v1548_v36 }
 0x29b   : > { %v2234_v8 = vpop.f32.mrf.mxu0 }
 0x29c   : > { %v1770_v56 = vadd.f32 %v2234_v8, %v4148_v12 }
 0x29d   : > { %v1764_v40 = vpop.f32.mrf.mxu0 }
 0x29e   : > { %v1908_v45 = vmax.f32 %v1770_v56, 0.0  ;;  %v1765_v46 = vadd.f32 %v4148_v12, %v1764_v40 }
 0x2a0   : > { %v1940_v48 = vmin.f32 %v1908_v45, 6.0  ;;  %v1907_v10 = vmax.f32 %v1765_v46, 0.0  ;;  %v2258_v19 = vpop.f32.mrf.mxu1 }
 0x2a1   : > { %v1850_v23 = vadd.f32 %v2258_v19, %v4148_v12 }
 0x2a2   : > { %1972 = vst [vmem:[%s4155_s10 + $0x28] sm:$0xff] %v1940_v48  ;;  %v1939_v42 = vmin.f32 %v1907_v10, 6.0  ;;  %v1844_v5 = vpop.f32.mrf.mxu1 }
 0x2a3   : > { %v1924_v0 = vmax.f32 %v1850_v23, 0.0  ;;  %v1845_v4 = vadd.f32 %v4148_v12, %v1844_v5 }
 0x2a4   : > { %1971 = vst [vmem:[%s4155_s10 + $0x20] sm:$0xff] %v1939_v42 }
 0x2a5   : > { %v1956_v18 = vmin.f32 %v1924_v0, 6.0  ;;  %v1923_v53 = vmax.f32 %v1845_v4, 0.0 }
 0x2a7   : > { %1988 = vst [vmem:[%s4155_s10 + $0xa8] sm:$0xff] %v1956_v18  ;;  %v1955_v14 = vmin.f32 %v1923_v53, 6.0 }
 0x2a9   : > { %1987 = vst [vmem:[%s4155_s10 + $0xa0] sm:$0xff] %v1955_v14 }
 0x2bf   : > { %v2237_v41 = vpop.f32.mrf.mxu0 }
 0x2c0   : > { %v1780_v21 = vadd.f32 %v2237_v41, %v4148_v12 }
 0x2c1   : > { %v1774_v29 = vpop.f32.mrf.mxu0 }
 0x2c2   : > { %v1910_v54 = vmax.f32 %v1780_v21, 0.0  ;;  %v1775_v13 = vadd.f32 %v4148_v12, %v1774_v29 }
 0x2c4   : > { %v1942_v50 = vmin.f32 %v1910_v54, 6.0  ;;  %v1909_v7 = vmax.f32 %v1775_v13, 0.0  ;;  %v2261_v1 = vpop.f32.mrf.mxu1 }
 0x2c5   : > { %v1860_v57 = vadd.f32 %v2261_v1, %v4148_v12 }
 0x2c6   : > { %1974 = vst [vmem:[%s4155_s10 + $0x38] sm:$0xff] %v1942_v50  ;;  %v1941_v34 = vmin.f32 %v1909_v7, 6.0  ;;  %v1854_v17 = vpop.f32.mrf.mxu1 }
 0x2c7   : > { %v1926_v61 = vmax.f32 %v1860_v57, 0.0  ;;  %v1855_v16 = vadd.f32 %v4148_v12, %v1854_v17 }
 0x2c8   : > { %1973 = vst [vmem:[%s4155_s10 + $0x30] sm:$0xff] %v1941_v34 }
 0x2c9   : > { %v1958_v20 = vmin.f32 %v1926_v61, 6.0  ;;  %v1925_v28 = vmax.f32 %v1855_v16, 0.0 }
 0x2cb   : > { %1990 = vst [vmem:[%s4155_s10 + $0xb8] sm:$0xff] %v1958_v20  ;;  %v1957_v26 = vmin.f32 %v1925_v28, 6.0 }
 0x2cd   : > { %1989 = vst [vmem:[%s4155_s10 + $0xb0] sm:$0xff] %v1957_v26 }
 0x2e3   : > { %v2240_v3 = vpop.f32.mrf.mxu0 }
 0x2e4   : > { %v1790_v59 = vadd.f32 %v2240_v3, %v4148_v12 }
 0x2e5   : > { %v1784_v24 = vpop.f32.mrf.mxu0 }
 0x2e6   : > { %v1912_v35 = vmax.f32 %v1790_v59, 0.0  ;;  %v1785_v62 = vadd.f32 %v4148_v12, %v1784_v24 }
 0x2e8   : > { %v1944_v33 = vmin.f32 %v1912_v35, 6.0  ;;  %v1911_v22 = vmax.f32 %v1785_v62, 0.0  ;;  %v2264_v47 = vpop.f32.mrf.mxu1 }
 0x2e9   : > { %v1870_v38 = vadd.f32 %v2264_v47, %v4148_v12 }
 0x2ea   : > { %1976 = vst [vmem:[%s4155_s10 + $0x48] sm:$0xff] %v1944_v33  ;;  %v1943_v6 = vmin.f32 %v1911_v22, 6.0  ;;  %v1864_v31 = vpop.f32.mrf.mxu1 }
 0x2eb   : > { %v1928_v63 = vmax.f32 %v1870_v38, 0.0  ;;  %v1865_v43 = vadd.f32 %v4148_v12, %v1864_v31 }
 0x2ec   : > { %1975 = vst [vmem:[%s4155_s10 + $0x40] sm:$0xff] %v1943_v6 }
 0x2ed   : > { %v1960_v51 = vmin.f32 %v1928_v63, 6.0  ;;  %v1927_v15 = vmax.f32 %v1865_v43, 0.0 }
 0x2ef   : > { %1992 = vst [vmem:[%s4155_s10 + $0xc8] sm:$0xff] %v1960_v51  ;;  %v1959_v37 = vmin.f32 %v1927_v15, 6.0 }
 0x2f1   : > { %1991 = vst [vmem:[%s4155_s10 + $0xc0] sm:$0xff] %v1959_v37 }
 0x30b   : > { %v2267_v30 = vpop.f32.mrf.mxu1 }
 0x30c   : > { %v2243_v32 = vpop.f32.mrf.mxu0  ;;  %v1880_v39 = vadd.f32 %v2267_v30, %v4148_v12 }
 0x30d   : > { %v1800_v25 = vadd.f32 %v2243_v32, %v4148_v12  ;;  %v1874_v55 = vpop.f32.mrf.mxu1 }
 0x30e   : > { %v1930_v11 = vmax.f32 %v1880_v39, 0.0  ;;  %v1794_v58 = vpop.f32.mrf.mxu0  ;;  %v1875_v2 = vadd.f32 %v4148_v12, %v1874_v55 }
 0x30f   : > { %v1914_v60 = vmax.f32 %v1800_v25, 0.0  ;;  %v1795_v52 = vadd.f32 %v4148_v12, %v1794_v58 }
 0x310   : > { %v1962_v44 = vmin.f32 %v1930_v11, 6.0  ;;  %v1929_v27 = vmax.f32 %v1875_v2, 0.0 }
 0x311   : > { %v1946_v9 = vmin.f32 %v1914_v60, 6.0  ;;  %v1913_v49 = vmax.f32 %v1795_v52, 0.0 }
 0x312   : > { %1994 = vst [vmem:[%s4155_s10 + $0xd8] sm:$0xff] %v1962_v44  ;;  %v1961_v36 = vmin.f32 %v1929_v27, 6.0 }
 0x313   : > { %1978 = vst [vmem:[%s4155_s10 + $0x58] sm:$0xff] %v1946_v9  ;;  %v1945_v8 = vmin.f32 %v1913_v49, 6.0 }
 0x314   : > { %1993 = vst [vmem:[%s4155_s10 + $0xd0] sm:$0xff] %v1961_v36 }
 0x315   : > { %1977 = vst [vmem:[%s4155_s10 + $0x50] sm:$0xff] %v1945_v8 }
 0x333   : > { %v2270_v56 = vpop.f32.mrf.mxu1 }
 0x334   : > { %v2246_v40 = vpop.f32.mrf.mxu0  ;;  %v1890_v45 = vadd.f32 %v2270_v56, %v4148_v12 }
 0x335   : > { %v1810_v46 = vadd.f32 %v2246_v40, %v4148_v12  ;;  %v1884_v48 = vpop.f32.mrf.mxu1 }
 0x336   : > { %v1932_v10 = vmax.f32 %v1890_v45, 0.0  ;;  %v1804_v19 = vpop.f32.mrf.mxu0  ;;  %v1885_v23 = vadd.f32 %v4148_v12, %v1884_v48 }
 0x337   : > { %v1916_v42 = vmax.f32 %v1810_v46, 0.0  ;;  %v1805_v5 = vadd.f32 %v4148_v12, %v1804_v19 }
 0x338   : > { %v1964_v0 = vmin.f32 %v1932_v10, 6.0  ;;  %v1931_v4 = vmax.f32 %v1885_v23, 0.0 }
 0x339   : > { %v1948_v18 = vmin.f32 %v1916_v42, 6.0  ;;  %v1915_v53 = vmax.f32 %v1805_v5, 0.0 }
 0x33a   : > { %1996 = vst [vmem:[%s4155_s10 + $0xe8] sm:$0xff] %v1964_v0  ;;  %v1963_v14 = vmin.f32 %v1931_v4, 6.0 }
 0x33b   : > { %1980 = vst [vmem:[%s4155_s10 + $0x68] sm:$0xff] %v1948_v18  ;;  %v1947_v41 = vmin.f32 %v1915_v53, 6.0 }
 0x33c   : > { %1995 = vst [vmem:[%s4155_s10 + $0xe0] sm:$0xff] %v1963_v14 }
 0x33d   : > { %1979 = vst [vmem:[%s4155_s10 + $0x60] sm:$0xff] %v1947_v41 }
 0x34f   : > { %v2273_v21 = vpop.f32.mrf.mxu1 }
 0x350   : > { %v2249_v29 = vpop.f32.mrf.mxu0  ;;  %v1900_v54 = vadd.f32 %v2273_v21, %v4148_v12 }
 0x351   : > { %v1820_v13 = vadd.f32 %v2249_v29, %v4148_v12  ;;  %v1894_v50 = vpop.f32.mrf.mxu1 }
 0x352   : > { %v1934_v7 = vmax.f32 %v1900_v54, 0.0  ;;  %v1814_v1 = vpop.f32.mrf.mxu0  ;;  %v1895_v57 = vadd.f32 %v4148_v12, %v1894_v50 }
 0x353   : > { %v1918_v34 = vmax.f32 %v1820_v13, 0.0  ;;  %v1815_v17 = vadd.f32 %v4148_v12, %v1814_v1 }
 0x354   : > { %v1966_v61 = vmin.f32 %v1934_v7, 6.0  ;;  %v1933_v16 = vmax.f32 %v1895_v57, 0.0 }
 0x355   : > { %v1950_v20 = vmin.f32 %v1918_v34, 6.0  ;;  %v1917_v28 = vmax.f32 %v1815_v17, 0.0 }
 0x356   : > { %1998 = vst [vmem:[%s4155_s10 + $0xf8] sm:$0xff] %v1966_v61  ;;  %v1965_v26 = vmin.f32 %v1933_v16, 6.0 }
 0x357   : > { %1982 = vst [vmem:[%s4155_s10 + $0x78] sm:$0xff] %v1950_v20  ;;  %v1949_v3 = vmin.f32 %v1917_v28, 6.0 }
 0x358   : > { %1997 = vst [vmem:[%s4155_s10 + $0xf0] sm:$0xff] %v1965_v26 }
 0x359   : > { %1981 = vst [vmem:[%s4155_s10 + $0x70] sm:$0xff] %v1949_v3 }
 0x35a   : > { %2382 = shalt.err (!%p2379_p5)
}
 0x35b   : > { %s2383_s4 = scalar_lea.hbm %s4286_s23, 4096  ;;  %s2387_s7 = scalar_lea.hbm %s4344_s3, 8192 }
 0x35c   : > { %p2384_p6 = scmp.ne.s32.totalorder %s4286_s23, %s2383_s4  ;;  %p2388_p10 = scmp.lt.s32.totalorder %s4286_s23, %s4344_s3 }
 0x35d   : > { %p2389_p11 = scmp.lt.s32.totalorder %s2387_s7, %s2383_s4 }
 0x35e   : > { %p2385_p7 = pnand %p2384_p6, %p2517_p4 }
 0x35f   : > { %p2390_p12 = por %p2389_p11, %p2388_p10 }
 0x360   : > { %p2386_p9 = pneg %p2385_p7 }
 0x362   : > { %p2391_p13 = pnand %p2390_p12, %p2386_p9 }
 0x364   : > { %2394 = shalt.err (!%p2391_p13)
}
 0x365   : > { %s2456_s10 = smov 128  }
 0x366   : > { %2285 = dma.vmem_to_hbm [thread:$0]  (%p2517_p4), %s4289_s18, 4096, %s4286_s23, %s4295_s15, %s2456_s10, %s2456_s10, %s2448_s5  }
 0x367 PF: > { %p2291_p0 = scmp.ge.s32.totalorder %s2445_s17, 2  ;;  %s2032_s11 = sand.u32 1, %s2425_s12  }
 0x368   : > { %s2033_s19 = scalar_lea.sflag [#allocation3], %s2032_s11 }
 0x369   : > { %p2288_p1 = pnand %p2291_p0, %p2524_p8 }
 0x36b   : > { %p2289_p2 = pneg %p2288_p1 }
 0x36d   : > { %2420 = dma.done.wait (%p2289_p2), %s2033_s19, 4096  }
 0x36e   : > { %2422 = vsyncadd (%p2289_p2), %s2033_s19, 4294963200  ;;  %s16_s17 = sadd.s32 1, %s2445_s17   ;;  %s4624_s12 = smov %s2429_s13 }
 0x36f   : > { %p13_p3 = scmp.ge.s32.totalorder %s16_s17, 4   ;;  %s4625_s13 = smov %s2433_s14 }
 0x370   : > { %s4626_s14 = smov %s2530_s25  ;;  %s4627_s15 = smov %s2441_s16 }
 0x371   : > { %s4628_s16 = smov %s4630_s20  ;;  %15 = sbr.rel (!%p13_p3) target bundleno = 4 (0x4), region = 73 }
 0x376   :  { %2038 = vsyncpa [#allocation3], 1 }
 0x377   :  { %2040 = vsyncpa [#allocation3 + $0x1], 1 }

</bundles_post_ra>
